<compile_context>
chip_gen: v7x
topology: tpu7x:2x2x1
jax: 0.10.0
libtpu: 0.0.40
codegen_flags: <defaults>
</compile_context>

<pallas_src>
import functools

import jax
import jax.numpy as jnp
from jax import lax
from jax.experimental import pallas as pl
from jax.experimental.pallas import tpu as pltpu

BN_EPS = 1e-5


def _bn(h, gamma, beta, relu6):
    """Training-mode BatchNorm over the lane (position) axis, per channel row.

    Uses the centered variance form (numerically stable, matches PyTorch)."""
    mean = jnp.mean(h, axis=1, keepdims=True)                        # (C, 1)
    var = jnp.mean((h - mean) * (h - mean), axis=1, keepdims=True)   # (C, 1)
    inv = lax.rsqrt(var + BN_EPS)
    y = (h - mean) * (inv * gamma) + beta
    if relu6:
        y = jnp.minimum(jnp.maximum(y, 0.0), 6.0)
    return y


def _inv_res_kernel(*refs, stride, expand, use_res, H, W, tc, P, halo):
    it = iter(refs)
    x_ref = next(it)          # (Cin, P)  f32, channels-first flattened spatial
    row_ref = next(it)        # (1, P)    int32 image-local row index
    col_ref = next(it)        # (1, P)    int32 image-local col index
    if expand:
        w1_ref, g1_ref, b1_ref = next(it), next(it), next(it)
    wdw_ref, g2_ref, b2_ref = next(it), next(it), next(it)
    w3_ref, g3_ref, b3_ref = next(it), next(it), next(it)
    sel_ref = next(it) if stride == 2 else None
    o_ref = next(it)          # (oup, P_out) f32, lane-dense output slab
    hbuf_ref = next(it)       # (tc, P + 2*halo) f32 staging buffer (shifted taps)
    yacc_ref = next(it)       # (oup, P_out) f32 projection accumulator

    k = pl.program_id(0)
    nb = pl.num_programs(0)

    @pl.when(k == 0)
    def _init():
        yacc_ref[...] = jnp.zeros_like(yacc_ref)

    row = row_ref[...]
    col = col_ref[...]

    # ---- stage 1: 1x1 expand conv (MXU, bf16 in / f32 acc) + BN + ReLU6 ----
    if expand:
        xb = x_ref[...].astype(jnp.bfloat16)                          # (Cin, P)
        h = jnp.dot(w1_ref[0], xb, preferred_element_type=jnp.float32)  # (tc, P)
        h = _bn(h, g1_ref[0], b1_ref[0], relu6=True)
    else:
        start = pl.multiple_of(k * tc, tc)
        h = x_ref[pl.ds(start, tc), :]                                # (tc, P)

    # ---- stage 2: 3x3 depthwise conv (VPU) + BN + ReLU6 --------------------
    # Stage h into a lane-padded buffer; only the halo is zeroed (every step,
    # since the scratch persists across grid iterations / kernel calls).
    hbuf_ref[:, :halo] = jnp.zeros((tc, halo), jnp.float32)
    hbuf_ref[:, halo + P:] = jnp.zeros((tc, halo), jnp.float32)
    hbuf_ref[:, halo:halo + P] = h

    wdw = wdw_ref[0]                                                  # (tc, 9)
    acc = jnp.zeros((tc, P), jnp.float32)
    for di in (-1, 0, 1):
        rmask = (row + di >= 0) & (row + di < H)
        for dj in (-1, 0, 1):
            ok = rmask & (col + dj >= 0) & (col + dj < W)             # (1, P)
            s = di * W + dj
            tap = hbuf_ref[:, halo + s:halo + s + P]                  # shifted window
            kidx = (di + 1) * 3 + (dj + 1)
            acc = acc + jnp.where(ok, tap, 0.0) * wdw[:, kidx:kidx + 1]

    if stride == 2:
        # One subsample of the stride-1 taps as a one-hot selection matmul.
        acc = jnp.dot(acc.astype(jnp.bfloat16), sel_ref[...],
                      preferred_element_type=jnp.float32)             # (tc, P_out)

    h2 = _bn(acc, g2_ref[0], b2_ref[0], relu6=True)

    # ---- stage 3: 1x1 projection conv (MXU), accumulated over channel blocks
    yacc_ref[...] += jnp.dot(w3_ref[0], h2.astype(jnp.bfloat16),
                             preferred_element_type=jnp.float32)

    # ---- finalize: BN3 (+ residual) on the fully accumulated projection ----
    @pl.when(k == nb - 1)
    def _fin():
        y = _bn(yacc_ref[...], g3_ref[...], b3_ref[...], relu6=False)
        if use_res:
            y = y + x_ref[...]
        o_ref[...] = y.astype(o_ref.dtype)


def _pick_channel_block(hidden, target=128):
    divs = [d for d in range(1, hidden + 1) if hidden % d == 0 and d <= target]
    mult8 = [d for d in divs if d % 8 == 0]
    return max(mult8) if mult8 else max(divs)


def inverted_residual(x_nchw, params, *, stride, expand_ratio, channel_block=None):
    """Pallas forward.  x_nchw: (N, Cin, H, W) float32 (PyTorch layout)."""
    assert stride in (1, 2)
    N, Cin, H, W = x_nchw.shape
    hidden = int(Cin * expand_ratio)
    oup = params["w3"].shape[1]
    expand = expand_ratio != 1
    use_res = (stride == 1) and (Cin == oup)
    Hout = (H - 1) // stride + 1
    Wout = (W - 1) // stride + 1
    P = N * H * W
    P_out = N * Hout * Wout

    tc = channel_block or _pick_channel_block(hidden)
    assert hidden % tc == 0
    nb = hidden // tc
    halo = ((W + 1 + 127) // 128) * 128   # lane-aligned halo >= max tap shift

    f32 = jnp.float32
    # channels-first, flattened-spatial-on-lanes layout
    x_cf = jnp.transpose(x_nchw, (1, 0, 2, 3)).reshape(Cin, P).astype(f32)

    ii = jnp.arange(H * W, dtype=jnp.int32) // W
    jj = jnp.arange(H * W, dtype=jnp.int32) % W
    row_ids = jnp.tile(ii, N).reshape(1, P)
    col_ids = jnp.tile(jj, N).reshape(1, P)

    def full_spec(arr):
        nd = arr.ndim
        return pl.BlockSpec(arr.shape, lambda k, _n=nd: (0,) * _n)

    def block_spec(a, b):
        return pl.BlockSpec((1, a, b), lambda k: (k, 0, 0))

    args, specs = [], []

    def add_full(arr):
        args.append(arr)
        specs.append(full_spec(arr))

    def add_blocked(arr):
        args.append(arr)
        specs.append(block_spec(arr.shape[1], arr.shape[2]))

    add_full(x_cf)
    add_full(row_ids)
    add_full(col_ids)

    if expand:
        # (Cin, hidden) -> (nb, tc, Cin), bf16 for the MXU
        w1_b = params["w1"].T.reshape(nb, tc, Cin).astype(jnp.bfloat16)
        add_blocked(w1_b)
        add_blocked(params["g1"].reshape(nb, tc, 1).astype(f32))
        add_blocked(params["b1"].reshape(nb, tc, 1).astype(f32))

    # (3, 3, hidden) -> (nb, tc, 9), f32 (depthwise stays on the VPU)
    wdw_b = params["wdw"].reshape(9, hidden).T.reshape(nb, tc, 9).astype(f32)
    add_blocked(wdw_b)
    add_blocked(params["g2"].reshape(nb, tc, 1).astype(f32))
    add_blocked(params["b2"].reshape(nb, tc, 1).astype(f32))

    # (hidden, oup) -> (nb, oup, tc), bf16 for the MXU
    w3_b = params["w3"].reshape(nb, tc, oup).transpose(0, 2, 1).astype(jnp.bfloat16)
    add_blocked(w3_b)
    add_full(params["g3"].reshape(oup, 1).astype(f32))
    add_full(params["b3"].reshape(oup, 1).astype(f32))

    if stride == 2:
        n_idx = jnp.arange(N, dtype=jnp.int32)[:, None, None]
        io = jnp.arange(Hout, dtype=jnp.int32)[None, :, None]
        jo = jnp.arange(Wout, dtype=jnp.int32)[None, None, :]
        src = (n_idx * (H * W) + (stride * io) * W + stride * jo).reshape(P_out)
        sel = (jnp.arange(P, dtype=jnp.int32)[:, None] == src[None, :]
               ).astype(jnp.bfloat16)                                  # (P, P_out)
        add_full(sel)

    kernel = functools.partial(
        _inv_res_kernel, stride=stride, expand=expand, use_res=use_res,
        H=H, W=W, tc=tc, P=P, halo=halo)

    scratch = [pltpu.VMEM((tc, P + 2 * halo), f32),
               pltpu.VMEM((oup, P_out), f32)]

    # Working-set estimate for the scoped-VMEM limit (v5e default is 16 MiB).
    resident = sum(int(a.size) * a.dtype.itemsize for a in args)
    working = resident + 4 * (tc * (P + 2 * halo) + oup * P_out)   # scratch
    working += 4 * 6 * tc * P                                       # temporaries
    vmem_limit = int(min(max(16 * 1024 * 1024, 2 * working), 64 * 1024 * 1024))

    out_cf = pl.pallas_call(
        kernel,
        out_shape=jax.ShapeDtypeStruct((oup, P_out), f32),
        grid_spec=pltpu.PrefetchScalarGridSpec(
            num_scalar_prefetch=0,
            grid=(nb,),
            in_specs=specs,
            out_specs=pl.BlockSpec((oup, P_out), lambda k: (0, 0)),
            scratch_shapes=scratch),
        compiler_params=pltpu.CompilerParams(
            dimension_semantics=("arbitrary",),   # reduction over channel blocks
            vmem_limit_bytes=vmem_limit),
    )(*args)

    return jnp.transpose(out_cf.reshape(oup, N, Hout, Wout), (1, 0, 2, 3))


# ----------------------- pure-JAX reference (for checking) -----------------------
def inverted_residual_ref(x_nchw, params, *, stride, expand_ratio):
    x = jnp.transpose(x_nchw, (0, 2, 3, 1)).astype(jnp.float32)
    Cin = x.shape[-1]
    hidden = int(Cin * expand_ratio)
    oup = params["w3"].shape[1]
    use_res = (stride == 1) and (Cin == oup)

    def bn(h, g, b, relu6):
        mean = h.mean(axis=(0, 1, 2), keepdims=True)
        var = ((h - mean) ** 2).mean(axis=(0, 1, 2), keepdims=True)
        y = (h - mean) / jnp.sqrt(var + BN_EPS)
        y = y * g.reshape(1, 1, 1, -1) + b.reshape(1, 1, 1, -1)
        return jnp.clip(y, 0.0, 6.0) if relu6 else y

    h = x
    if expand_ratio != 1:
        h = jnp.einsum("nhwc,cd->nhwd", x, params["w1"])
        h = bn(h, params["g1"], params["b1"], True)
    dw_w = params["wdw"].reshape(3, 3, 1, hidden)
    h = lax.conv_general_dilated(
        h, dw_w, window_strides=(stride, stride), padding=((1, 1), (1, 1)),
        dimension_numbers=("NHWC", "HWIO", "NHWC"),
        feature_group_count=hidden)
    h = bn(h, params["g2"], params["b2"], True)
    y = jnp.einsum("nhwc,cd->nhwd", h, params["w3"])
    y = bn(y, params["g3"], params["b3"], False)
    if use_res:
        y = y + x
    return jnp.transpose(y, (0, 3, 1, 2))


def make_params(key, inp, oup, expand_ratio):
    hidden = int(inp * expand_ratio)
    ks = jax.random.split(key, 8)
    p = {
        "wdw": 0.2 * jax.random.normal(ks[1], (3, 3, hidden), jnp.float32),
        "g2": 1.0 + 0.1 * jax.random.normal(ks[2], (1, hidden), jnp.float32),
        "b2": 0.1 * jax.random.normal(ks[3], (1, hidden), jnp.float32),
        "w3": 0.2 * jax.random.normal(ks[4], (hidden, oup), jnp.float32),
        "g3": 1.0 + 0.1 * jax.random.normal(ks[5], (1, oup), jnp.float32),
        "b3": 0.1 * jax.random.normal(ks[6], (1, oup), jnp.float32),
    }
    if expand_ratio != 1:
        k7, k8, _ = jax.random.split(ks[7], 3)
        p["w1"] = 0.2 * jax.random.normal(ks[0], (inp, hidden), jnp.float32)
        p["g1"] = 1.0 + 0.1 * jax.random.normal(k7, (1, hidden), jnp.float32)
        p["b1"] = 0.1 * jax.random.normal(k8, (1, hidden), jnp.float32)
    return p


if __name__ == "__main__":
    N, H, W = 2, 16, 16
    cfgs = [
        # (inp, oup, stride, expand_ratio, channel_block)
        (4, 4, 1, 6, 8),     # expand path, residual, 3 channel-blocks on the grid
        (4, 8, 2, 6, 8),     # stride-2 path (one-hot subsample matmul)
        (4, 4, 1, 1, None),  # expand_ratio == 1 path
    ]
    keys = jax.random.split(jax.random.PRNGKey(0), 2 * len(cfgs))
    for idx, (inp, oup, stride, er, cb) in enumerate(cfgs):
        kx, kp = keys[2 * idx], keys[2 * idx + 1]
        x = jax.random.normal(kx, (N, inp, H, W), jnp.float32)
        params = make_params(kp, inp, oup, er)

        out = inverted_residual(x, params, stride=stride, expand_ratio=er,
                                channel_block=cb)
        out = jax.block_until_ready(out)

        ref = inverted_residual_ref(x, params, stride=stride, expand_ratio=er)
        Hout = (H - 1) // stride + 1
        Wout = (W - 1) // stride + 1
        assert out.shape == (N, oup, Hout, Wout), out.shape
        # bf16 MXU inputs (f32 accumulation) introduce a small numeric deviation
        # from the pure-f32 reference; structural errors would be O(1).
        max_err = float(jnp.max(jnp.abs(out - ref)))
        assert jnp.allclose(out, ref, rtol=5e-2, atol=5e-2), (idx, max_err)
    print("KERNEL_OK")
</pallas_src>

<mosaic_0001>
module attributes {stable_mosaic.version = 11 : i64} {
  func.func @_inv_res_kernel(%arg0: i32, %arg1: memref<4x512xf32, #tpu.memory_space<vmem>>, %arg2: memref<1x512xi32, #tpu.memory_space<vmem>>, %arg3: memref<1x512xi32, #tpu.memory_space<vmem>>, %arg4: memref<1x8x4xbf16, #tpu.memory_space<vmem>>, %arg5: memref<1x8x1xf32, #tpu.memory_space<vmem>>, %arg6: memref<1x8x1xf32, #tpu.memory_space<vmem>>, %arg7: memref<1x8x9xf32, #tpu.memory_space<vmem>>, %arg8: memref<1x8x1xf32, #tpu.memory_space<vmem>>, %arg9: memref<1x8x1xf32, #tpu.memory_space<vmem>>, %arg10: memref<1x4x8xbf16, #tpu.memory_space<vmem>>, %arg11: memref<4x1xf32, #tpu.memory_space<vmem>>, %arg12: memref<4x1xf32, #tpu.memory_space<vmem>>, %arg13: memref<4x512xf32, #tpu.memory_space<vmem>>, %arg14: memref<8x768xf32, #tpu.memory_space<vmem>>, %arg15: memref<4x512xf32, #tpu.memory_space<vmem>>) attributes {dimension_semantics = [#tpu.dimension_semantics<arbitrary>], iteration_bounds = array<i64: 3>, scalar_prefetch = 0 : i64, scratch_operands = 2 : i64, tpu.core_type = #tpu.core_type<tc>, window_params = [{pipeline_mode = #tpu.pipeline_mode<synchronous>, transform_indices = @transform_0, window_bounds = array<i64: 4, 512>}, {pipeline_mode = #tpu.pipeline_mode<synchronous>, transform_indices = @transform_1, window_bounds = array<i64: 1, 512>}, {pipeline_mode = #tpu.pipeline_mode<synchronous>, transform_indices = @transform_2, window_bounds = array<i64: 1, 512>}, {transform_indices = @transform_3, window_bounds = array<i64: 1, 8, 4>}, {transform_indices = @transform_4, window_bounds = array<i64: 1, 8, 1>}, {transform_indices = @transform_5, window_bounds = array<i64: 1, 8, 1>}, {transform_indices = @transform_6, window_bounds = array<i64: 1, 8, 9>}, {transform_indices = @transform_7, window_bounds = array<i64: 1, 8, 1>}, {transform_indices = @transform_8, window_bounds = array<i64: 1, 8, 1>}, {transform_indices = @transform_9, window_bounds = array<i64: 1, 4, 8>}, {pipeline_mode = #tpu.pipeline_mode<synchronous>, transform_indices = @transform_10, window_bounds = array<i64: 4, 1>}, {pipeline_mode = #tpu.pipeline_mode<synchronous>, transform_indices = @transform_11, window_bounds = array<i64: 4, 1>}, {pipeline_mode = #tpu.pipeline_mode<synchronous>, transform_indices = @transform_12, window_bounds = array<i64: 4, 512>}]} {
    %c0_i32 = arith.constant 0 : i32
    %0 = arith.cmpi eq, %arg0, %c0_i32 : i32
    %1 = arith.extui %0 : i1 to i32
    %c0_i32_0 = arith.constant 0 : i32
    %2 = arith.cmpi ne, %1, %c0_i32_0 : i32
    scf.if %2 {
      %cst_118 = arith.constant 0.000000e+00 : f32
      %288 = vector.broadcast %cst_118 : f32 to vector<4x512xf32>
      %c0_119 = arith.constant 0 : index
      %c0_120 = arith.constant 0 : index
      %289 = vector.load %arg15[%c0_119, %c0_120] : memref<4x512xf32, #tpu.memory_space<vmem>>, vector<4x512xf32>
      tpu.vector_store %arg15[%c0_119, %c0_120], %288 {strides = array<i32>} : memref<4x512xf32, #tpu.memory_space<vmem>>, vector<4x512xf32>,
    } else {
    }
    %c0 = arith.constant 0 : index
    %c0_1 = arith.constant 0 : index
    %3 = vector.load %arg2[%c0, %c0_1] : memref<1x512xi32, #tpu.memory_space<vmem>>, vector<1x512xi32>
    %c0_2 = arith.constant 0 : index
    %c0_3 = arith.constant 0 : index
    %4 = vector.load %arg3[%c0_2, %c0_3] : memref<1x512xi32, #tpu.memory_space<vmem>>, vector<1x512xi32>
    %c0_4 = arith.constant 0 : index
    %c0_5 = arith.constant 0 : index
    %5 = vector.load %arg1[%c0_4, %c0_5] : memref<4x512xf32, #tpu.memory_space<vmem>>, vector<4x512xf32>
    %6 = arith.truncf %5 : vector<4x512xf32> to vector<4x512xbf16>
    %c0_6 = arith.constant 0 : index
    %c0_7 = arith.constant 0 : index
    %c0_8 = arith.constant 0 : index
    %7 = vector.load %arg4[%c0_6, %c0_7, %c0_8] : memref<1x8x4xbf16, #tpu.memory_space<vmem>>, vector<1x8x4xbf16>
    %8 = vector.shape_cast %7 : vector<1x8x4xbf16> to vector<8x4xbf16>
    %cst = arith.constant dense<0.000000e+00> : vector<8x512xf32>
    %9 = tpu.matmul %8, %6, %cst {dimension_numbers = #tpu.dot_dimension_numbers<[1], [0], [0], [1], [0, 0, 1, 1], [], []>} : vector<8x4xbf16>, vector<4x512xbf16>, vector<8x512xf32> -> vector<8x512xf32>
    %c0_9 = arith.constant 0 : index
    %c0_10 = arith.constant 0 : index
    %c0_11 = arith.constant 0 : index
    %10 = vector.load %arg5[%c0_9, %c0_10, %c0_11] : memref<1x8x1xf32, #tpu.memory_space<vmem>>, vector<1x8x1xf32>
    %11 = vector.shape_cast %10 : vector<1x8x1xf32> to vector<8x1xf32>
    %c0_12 = arith.constant 0 : index
    %c0_13 = arith.constant 0 : index
    %c0_14 = arith.constant 0 : index
    %12 = vector.load %arg6[%c0_12, %c0_13, %c0_14] : memref<1x8x1xf32, #tpu.memory_space<vmem>>, vector<1x8x1xf32>
    %13 = vector.shape_cast %12 : vector<1x8x1xf32> to vector<8x1xf32>
    %cst_15 = arith.constant dense<0.000000e+00> : vector<8xf32>
    %14 = vector.multi_reduction <add>, %9, %cst_15 [1] : vector<8x512xf32> to vector<8xf32>
    %15 = vector.shape_cast %14 : vector<8xf32> to vector<8x1xf32>
    %cst_16 = arith.constant 5.120000e+02 : f32
    %16 = vector.broadcast %cst_16 : f32 to vector<8x1xf32>
    %17 = arith.divf %15, %16 : vector<8x1xf32>
    %18 = vector.broadcast %17 : vector<8x1xf32> to vector<8x512xf32>
    %19 = arith.subf %9, %18 : vector<8x512xf32>
    %20 = vector.broadcast %17 : vector<8x1xf32> to vector<8x512xf32>
    %21 = arith.subf %9, %20 : vector<8x512xf32>
    %22 = arith.mulf %19, %21 : vector<8x512xf32>
    %cst_17 = arith.constant dense<0.000000e+00> : vector<8xf32>
    %23 = vector.multi_reduction <add>, %22, %cst_17 [1] : vector<8x512xf32> to vector<8xf32>
    %24 = vector.shape_cast %23 : vector<8xf32> to vector<8x1xf32>
    %cst_18 = arith.constant 5.120000e+02 : f32
    %25 = vector.broadcast %cst_18 : f32 to vector<8x1xf32>
    %26 = arith.divf %24, %25 : vector<8x1xf32>
    %cst_19 = arith.constant 9.99999974E-6 : f32
    %27 = vector.broadcast %cst_19 : f32 to vector<8x1xf32>
    %28 = arith.addf %26, %27 : vector<8x1xf32>
    %29 = math.rsqrt %28 : vector<8x1xf32>
    %30 = vector.broadcast %17 : vector<8x1xf32> to vector<8x512xf32>
    %31 = arith.subf %9, %30 : vector<8x512xf32>
    %32 = arith.mulf %29, %11 : vector<8x1xf32>
    %33 = vector.broadcast %32 : vector<8x1xf32> to vector<8x512xf32>
    %34 = arith.mulf %31, %33 : vector<8x512xf32>
    %35 = vector.broadcast %13 : vector<8x1xf32> to vector<8x512xf32>
    %36 = arith.addf %34, %35 : vector<8x512xf32>
    %cst_20 = arith.constant 0.000000e+00 : f32
    %37 = vector.broadcast %cst_20 : f32 to vector<8x512xf32>
    %38 = arith.maximumf %36, %37 : vector<8x512xf32>
    %cst_21 = arith.constant 6.000000e+00 : f32
    %39 = vector.broadcast %cst_21 : f32 to vector<8x512xf32>
    %40 = arith.minimumf %38, %39 : vector<8x512xf32>
    %cst_22 = arith.constant 0.000000e+00 : f32
    %41 = vector.broadcast %cst_22 : f32 to vector<8x128xf32>
    %c0_23 = arith.constant 0 : index
    %c0_24 = arith.constant 0 : index
    %42 = vector.load %arg14[%c0_23, %c0_24] : memref<8x768xf32, #tpu.memory_space<vmem>>, vector<8x128xf32>
    tpu.vector_store %arg14[%c0_23, %c0_24], %41 {strides = array<i32>} : memref<8x768xf32, #tpu.memory_space<vmem>>, vector<8x128xf32>,
    %cst_25 = arith.constant 0.000000e+00 : f32
    %43 = vector.broadcast %cst_25 : f32 to vector<8x128xf32>
    %c0_26 = arith.constant 0 : index
    %c640 = arith.constant 640 : index
    %44 = vector.load %arg14[%c0_26, %c640] : memref<8x768xf32, #tpu.memory_space<vmem>>, vector<8x128xf32>
    tpu.vector_store %arg14[%c0_26, %c640], %43 {strides = array<i32>} : memref<8x768xf32, #tpu.memory_space<vmem>>, vector<8x128xf32>,
    %c0_27 = arith.constant 0 : index
    %c128 = arith.constant 128 : index
    %45 = vector.load %arg14[%c0_27, %c128] : memref<8x768xf32, #tpu.memory_space<vmem>>, vector<8x512xf32>
    tpu.vector_store %arg14[%c0_27, %c128], %40 {strides = array<i32>} : memref<8x768xf32, #tpu.memory_space<vmem>>, vector<8x512xf32>,
    %c0_28 = arith.constant 0 : index
    %c0_29 = arith.constant 0 : index
    %c0_30 = arith.constant 0 : index
    %46 = vector.load %arg7[%c0_28, %c0_29, %c0_30] : memref<1x8x9xf32, #tpu.memory_space<vmem>>, vector<1x8x9xf32>
    %47 = vector.shape_cast %46 : vector<1x8x9xf32> to vector<8x9xf32>
    %cst_31 = arith.constant 0.000000e+00 : f32
    %48 = vector.broadcast %cst_31 : f32 to vector<8x512xf32>
    %c-1_i32 = arith.constant -1 : i32
    %49 = vector.broadcast %c-1_i32 : i32 to vector<1x512xi32>
    %50 = arith.addi %3, %49 : vector<1x512xi32>
    %c0_i32_32 = arith.constant 0 : i32
    %51 = vector.broadcast %c0_i32_32 : i32 to vector<1x512xi32>
    %52 = arith.cmpi sge, %50, %51 : vector<1x512xi32>
    %c-1_i32_33 = arith.constant -1 : i32
    %53 = vector.broadcast %c-1_i32_33 : i32 to vector<1x512xi32>
    %54 = arith.addi %3, %53 : vector<1x512xi32>
    %c16_i32 = arith.constant 16 : i32
    %55 = vector.broadcast %c16_i32 : i32 to vector<1x512xi32>
    %56 = arith.cmpi slt, %54, %55 : vector<1x512xi32>
    %57 = arith.andi %52, %56 : vector<1x512xi1>
    %c-1_i32_34 = arith.constant -1 : i32
    %58 = vector.broadcast %c-1_i32_34 : i32 to vector<1x512xi32>
    %59 = arith.addi %4, %58 : vector<1x512xi32>
    %c0_i32_35 = arith.constant 0 : i32
    %60 = vector.broadcast %c0_i32_35 : i32 to vector<1x512xi32>
    %61 = arith.cmpi sge, %59, %60 : vector<1x512xi32>
    %62 = arith.andi %57, %61 : vector<1x512xi1>
    %c-1_i32_36 = arith.constant -1 : i32
    %63 = vector.broadcast %c-1_i32_36 : i32 to vector<1x512xi32>
    %64 = arith.addi %4, %63 : vector<1x512xi32>
    %c16_i32_37 = arith.constant 16 : i32
    %65 = vector.broadcast %c16_i32_37 : i32 to vector<1x512xi32>
    %66 = arith.cmpi slt, %64, %65 : vector<1x512xi32>
    %67 = arith.andi %62, %66 : vector<1x512xi1>
    %c0_38 = arith.constant 0 : index
    %c111 = arith.constant 111 : index
    %68 = vector.load %arg14[%c0_38, %c111] : memref<8x768xf32, #tpu.memory_space<vmem>>, vector<8x512xf32>
    %cst_39 = arith.constant 0.000000e+00 : f32
    %69 = vector.shape_cast %67 : vector<1x512xi1> to vector<1x512xi1>
    %70 = vector.broadcast %69 : vector<1x512xi1> to vector<8x512xi1>
    %71 = vector.broadcast %cst_39 : f32 to vector<8x512xf32>
    %72 = arith.select %70, %68, %71 : vector<8x512xi1>, vector<8x512xf32>
    %73 = vector.extract_strided_slice %47 {offsets = [0, 0], sizes = [8, 1], strides = [1, 1]} : vector<8x9xf32> to vector<8x1xf32>
    %74 = vector.broadcast %73 : vector<8x1xf32> to vector<8x512xf32>
    %75 = arith.mulf %72, %74 : vector<8x512xf32>
    %76 = arith.addf %48, %75 : vector<8x512xf32>
    %c0_i32_40 = arith.constant 0 : i32
    %77 = vector.broadcast %c0_i32_40 : i32 to vector<1x512xi32>
    %78 = arith.addi %4, %77 : vector<1x512xi32>
    %c0_i32_41 = arith.constant 0 : i32
    %79 = vector.broadcast %c0_i32_41 : i32 to vector<1x512xi32>
    %80 = arith.cmpi sge, %78, %79 : vector<1x512xi32>
    %81 = arith.andi %57, %80 : vector<1x512xi1>
    %c0_i32_42 = arith.constant 0 : i32
    %82 = vector.broadcast %c0_i32_42 : i32 to vector<1x512xi32>
    %83 = arith.addi %4, %82 : vector<1x512xi32>
    %c16_i32_43 = arith.constant 16 : i32
    %84 = vector.broadcast %c16_i32_43 : i32 to vector<1x512xi32>
    %85 = arith.cmpi slt, %83, %84 : vector<1x512xi32>
    %86 = arith.andi %81, %85 : vector<1x512xi1>
    %c0_44 = arith.constant 0 : index
    %c112 = arith.constant 112 : index
    %87 = vector.load %arg14[%c0_44, %c112] : memref<8x768xf32, #tpu.memory_space<vmem>>, vector<8x512xf32>
    %cst_45 = arith.constant 0.000000e+00 : f32
    %88 = vector.shape_cast %86 : vector<1x512xi1> to vector<1x512xi1>
    %89 = vector.broadcast %88 : vector<1x512xi1> to vector<8x512xi1>
    %90 = vector.broadcast %cst_45 : f32 to vector<8x512xf32>
    %91 = arith.select %89, %87, %90 : vector<8x512xi1>, vector<8x512xf32>
    %92 = vector.extract_strided_slice %47 {offsets = [0, 1], sizes = [8, 1], strides = [1, 1]} : vector<8x9xf32> to vector<8x1xf32>
    %93 = vector.broadcast %92 : vector<8x1xf32> to vector<8x512xf32>
    %94 = arith.mulf %91, %93 : vector<8x512xf32>
    %95 = arith.addf %76, %94 : vector<8x512xf32>
    %c1_i32 = arith.constant 1 : i32
    %96 = vector.broadcast %c1_i32 : i32 to vector<1x512xi32>
    %97 = arith.addi %4, %96 : vector<1x512xi32>
    %c0_i32_46 = arith.constant 0 : i32
    %98 = vector.broadcast %c0_i32_46 : i32 to vector<1x512xi32>
    %99 = arith.cmpi sge, %97, %98 : vector<1x512xi32>
    %100 = arith.andi %57, %99 : vector<1x512xi1>
    %c1_i32_47 = arith.constant 1 : i32
    %101 = vector.broadcast %c1_i32_47 : i32 to vector<1x512xi32>
    %102 = arith.addi %4, %101 : vector<1x512xi32>
    %c16_i32_48 = arith.constant 16 : i32
    %103 = vector.broadcast %c16_i32_48 : i32 to vector<1x512xi32>
    %104 = arith.cmpi slt, %102, %103 : vector<1x512xi32>
    %105 = arith.andi %100, %104 : vector<1x512xi1>
    %c0_49 = arith.constant 0 : index
    %c113 = arith.constant 113 : index
    %106 = vector.load %arg14[%c0_49, %c113] : memref<8x768xf32, #tpu.memory_space<vmem>>, vector<8x512xf32>
    %cst_50 = arith.constant 0.000000e+00 : f32
    %107 = vector.shape_cast %105 : vector<1x512xi1> to vector<1x512xi1>
    %108 = vector.broadcast %107 : vector<1x512xi1> to vector<8x512xi1>
    %109 = vector.broadcast %cst_50 : f32 to vector<8x512xf32>
    %110 = arith.select %108, %106, %109 : vector<8x512xi1>, vector<8x512xf32>
    %111 = vector.extract_strided_slice %47 {offsets = [0, 2], sizes = [8, 1], strides = [1, 1]} : vector<8x9xf32> to vector<8x1xf32>
    %112 = vector.broadcast %111 : vector<8x1xf32> to vector<8x512xf32>
    %113 = arith.mulf %110, %112 : vector<8x512xf32>
    %114 = arith.addf %95, %113 : vector<8x512xf32>
    %c0_i32_51 = arith.constant 0 : i32
    %115 = vector.broadcast %c0_i32_51 : i32 to vector<1x512xi32>
    %116 = arith.addi %3, %115 : vector<1x512xi32>
    %c0_i32_52 = arith.constant 0 : i32
    %117 = vector.broadcast %c0_i32_52 : i32 to vector<1x512xi32>
    %118 = arith.cmpi sge, %116, %117 : vector<1x512xi32>
    %c0_i32_53 = arith.constant 0 : i32
    %119 = vector.broadcast %c0_i32_53 : i32 to vector<1x512xi32>
    %120 = arith.addi %3, %119 : vector<1x512xi32>
    %c16_i32_54 = arith.constant 16 : i32
    %121 = vector.broadcast %c16_i32_54 : i32 to vector<1x512xi32>
    %122 = arith.cmpi slt, %120, %121 : vector<1x512xi32>
    %123 = arith.andi %118, %122 : vector<1x512xi1>
    %c-1_i32_55 = arith.constant -1 : i32
    %124 = vector.broadcast %c-1_i32_55 : i32 to vector<1x512xi32>
    %125 = arith.addi %4, %124 : vector<1x512xi32>
    %c0_i32_56 = arith.constant 0 : i32
    %126 = vector.broadcast %c0_i32_56 : i32 to vector<1x512xi32>
    %127 = arith.cmpi sge, %125, %126 : vector<1x512xi32>
    %128 = arith.andi %123, %127 : vector<1x512xi1>
    %c-1_i32_57 = arith.constant -1 : i32
    %129 = vector.broadcast %c-1_i32_57 : i32 to vector<1x512xi32>
    %130 = arith.addi %4, %129 : vector<1x512xi32>
    %c16_i32_58 = arith.constant 16 : i32
    %131 = vector.broadcast %c16_i32_58 : i32 to vector<1x512xi32>
    %132 = arith.cmpi slt, %130, %131 : vector<1x512xi32>
    %133 = arith.andi %128, %132 : vector<1x512xi1>
    %c0_59 = arith.constant 0 : index
    %c127 = arith.constant 127 : index
    %134 = vector.load %arg14[%c0_59, %c127] : memref<8x768xf32, #tpu.memory_space<vmem>>, vector<8x512xf32>
    %cst_60 = arith.constant 0.000000e+00 : f32
    %135 = vector.shape_cast %133 : vector<1x512xi1> to vector<1x512xi1>
    %136 = vector.broadcast %135 : vector<1x512xi1> to vector<8x512xi1>
    %137 = vector.broadcast %cst_60 : f32 to vector<8x512xf32>
    %138 = arith.select %136, %134, %137 : vector<8x512xi1>, vector<8x512xf32>
    %139 = vector.extract_strided_slice %47 {offsets = [0, 3], sizes = [8, 1], strides = [1, 1]} : vector<8x9xf32> to vector<8x1xf32>
    %140 = vector.broadcast %139 : vector<8x1xf32> to vector<8x512xf32>
    %141 = arith.mulf %138, %140 : vector<8x512xf32>
    %142 = arith.addf %114, %141 : vector<8x512xf32>
    %c0_i32_61 = arith.constant 0 : i32
    %143 = vector.broadcast %c0_i32_61 : i32 to vector<1x512xi32>
    %144 = arith.addi %4, %143 : vector<1x512xi32>
    %c0_i32_62 = arith.constant 0 : i32
    %145 = vector.broadcast %c0_i32_62 : i32 to vector<1x512xi32>
    %146 = arith.cmpi sge, %144, %145 : vector<1x512xi32>
    %147 = arith.andi %123, %146 : vector<1x512xi1>
    %c0_i32_63 = arith.constant 0 : i32
    %148 = vector.broadcast %c0_i32_63 : i32 to vector<1x512xi32>
    %149 = arith.addi %4, %148 : vector<1x512xi32>
    %c16_i32_64 = arith.constant 16 : i32
    %150 = vector.broadcast %c16_i32_64 : i32 to vector<1x512xi32>
    %151 = arith.cmpi slt, %149, %150 : vector<1x512xi32>
    %152 = arith.andi %147, %151 : vector<1x512xi1>
    %c0_65 = arith.constant 0 : index
    %c128_66 = arith.constant 128 : index
    %153 = vector.load %arg14[%c0_65, %c128_66] : memref<8x768xf32, #tpu.memory_space<vmem>>, vector<8x512xf32>
    %cst_67 = arith.constant 0.000000e+00 : f32
    %154 = vector.shape_cast %152 : vector<1x512xi1> to vector<1x512xi1>
    %155 = vector.broadcast %154 : vector<1x512xi1> to vector<8x512xi1>
    %156 = vector.broadcast %cst_67 : f32 to vector<8x512xf32>
    %157 = arith.select %155, %153, %156 : vector<8x512xi1>, vector<8x512xf32>
    %158 = vector.extract_strided_slice %47 {offsets = [0, 4], sizes = [8, 1], strides = [1, 1]} : vector<8x9xf32> to vector<8x1xf32>
    %159 = vector.broadcast %158 : vector<8x1xf32> to vector<8x512xf32>
    %160 = arith.mulf %157, %159 : vector<8x512xf32>
    %161 = arith.addf %142, %160 : vector<8x512xf32>
    %c1_i32_68 = arith.constant 1 : i32
    %162 = vector.broadcast %c1_i32_68 : i32 to vector<1x512xi32>
    %163 = arith.addi %4, %162 : vector<1x512xi32>
    %c0_i32_69 = arith.constant 0 : i32
    %164 = vector.broadcast %c0_i32_69 : i32 to vector<1x512xi32>
    %165 = arith.cmpi sge, %163, %164 : vector<1x512xi32>
    %166 = arith.andi %123, %165 : vector<1x512xi1>
    %c1_i32_70 = arith.constant 1 : i32
    %167 = vector.broadcast %c1_i32_70 : i32 to vector<1x512xi32>
    %168 = arith.addi %4, %167 : vector<1x512xi32>
    %c16_i32_71 = arith.constant 16 : i32
    %169 = vector.broadcast %c16_i32_71 : i32 to vector<1x512xi32>
    %170 = arith.cmpi slt, %168, %169 : vector<1x512xi32>
    %171 = arith.andi %166, %170 : vector<1x512xi1>
    %c0_72 = arith.constant 0 : index
    %c129 = arith.constant 129 : index
    %172 = vector.load %arg14[%c0_72, %c129] : memref<8x768xf32, #tpu.memory_space<vmem>>, vector<8x512xf32>
    %cst_73 = arith.constant 0.000000e+00 : f32
    %173 = vector.shape_cast %171 : vector<1x512xi1> to vector<1x512xi1>
    %174 = vector.broadcast %173 : vector<1x512xi1> to vector<8x512xi1>
    %175 = vector.broadcast %cst_73 : f32 to vector<8x512xf32>
    %176 = arith.select %174, %172, %175 : vector<8x512xi1>, vector<8x512xf32>
    %177 = vector.extract_strided_slice %47 {offsets = [0, 5], sizes = [8, 1], strides = [1, 1]} : vector<8x9xf32> to vector<8x1xf32>
    %178 = vector.broadcast %177 : vector<8x1xf32> to vector<8x512xf32>
    %179 = arith.mulf %176, %178 : vector<8x512xf32>
    %180 = arith.addf %161, %179 : vector<8x512xf32>
    %c1_i32_74 = arith.constant 1 : i32
    %181 = vector.broadcast %c1_i32_74 : i32 to vector<1x512xi32>
    %182 = arith.addi %3, %181 : vector<1x512xi32>
    %c0_i32_75 = arith.constant 0 : i32
    %183 = vector.broadcast %c0_i32_75 : i32 to vector<1x512xi32>
    %184 = arith.cmpi sge, %182, %183 : vector<1x512xi32>
    %c1_i32_76 = arith.constant 1 : i32
    %185 = vector.broadcast %c1_i32_76 : i32 to vector<1x512xi32>
    %186 = arith.addi %3, %185 : vector<1x512xi32>
    %c16_i32_77 = arith.constant 16 : i32
    %187 = vector.broadcast %c16_i32_77 : i32 to vector<1x512xi32>
    %188 = arith.cmpi slt, %186, %187 : vector<1x512xi32>
    %189 = arith.andi %184, %188 : vector<1x512xi1>
    %c-1_i32_78 = arith.constant -1 : i32
    %190 = vector.broadcast %c-1_i32_78 : i32 to vector<1x512xi32>
    %191 = arith.addi %4, %190 : vector<1x512xi32>
    %c0_i32_79 = arith.constant 0 : i32
    %192 = vector.broadcast %c0_i32_79 : i32 to vector<1x512xi32>
    %193 = arith.cmpi sge, %191, %192 : vector<1x512xi32>
    %194 = arith.andi %189, %193 : vector<1x512xi1>
    %c-1_i32_80 = arith.constant -1 : i32
    %195 = vector.broadcast %c-1_i32_80 : i32 to vector<1x512xi32>
    %196 = arith.addi %4, %195 : vector<1x512xi32>
    %c16_i32_81 = arith.constant 16 : i32
    %197 = vector.broadcast %c16_i32_81 : i32 to vector<1x512xi32>
    %198 = arith.cmpi slt, %196, %197 : vector<1x512xi32>
    %199 = arith.andi %194, %198 : vector<1x512xi1>
    %c0_82 = arith.constant 0 : index
    %c143 = arith.constant 143 : index
    %200 = vector.load %arg14[%c0_82, %c143] : memref<8x768xf32, #tpu.memory_space<vmem>>, vector<8x512xf32>
    %cst_83 = arith.constant 0.000000e+00 : f32
    %201 = vector.shape_cast %199 : vector<1x512xi1> to vector<1x512xi1>
    %202 = vector.broadcast %201 : vector<1x512xi1> to vector<8x512xi1>
    %203 = vector.broadcast %cst_83 : f32 to vector<8x512xf32>
    %204 = arith.select %202, %200, %203 : vector<8x512xi1>, vector<8x512xf32>
    %205 = vector.extract_strided_slice %47 {offsets = [0, 6], sizes = [8, 1], strides = [1, 1]} : vector<8x9xf32> to vector<8x1xf32>
    %206 = vector.broadcast %205 : vector<8x1xf32> to vector<8x512xf32>
    %207 = arith.mulf %204, %206 : vector<8x512xf32>
    %208 = arith.addf %180, %207 : vector<8x512xf32>
    %c0_i32_84 = arith.constant 0 : i32
    %209 = vector.broadcast %c0_i32_84 : i32 to vector<1x512xi32>
    %210 = arith.addi %4, %209 : vector<1x512xi32>
    %c0_i32_85 = arith.constant 0 : i32
    %211 = vector.broadcast %c0_i32_85 : i32 to vector<1x512xi32>
    %212 = arith.cmpi sge, %210, %211 : vector<1x512xi32>
    %213 = arith.andi %189, %212 : vector<1x512xi1>
    %c0_i32_86 = arith.constant 0 : i32
    %214 = vector.broadcast %c0_i32_86 : i32 to vector<1x512xi32>
    %215 = arith.addi %4, %214 : vector<1x512xi32>
    %c16_i32_87 = arith.constant 16 : i32
    %216 = vector.broadcast %c16_i32_87 : i32 to vector<1x512xi32>
    %217 = arith.cmpi slt, %215, %216 : vector<1x512xi32>
    %218 = arith.andi %213, %217 : vector<1x512xi1>
    %c0_88 = arith.constant 0 : index
    %c144 = arith.constant 144 : index
    %219 = vector.load %arg14[%c0_88, %c144] : memref<8x768xf32, #tpu.memory_space<vmem>>, vector<8x512xf32>
    %cst_89 = arith.constant 0.000000e+00 : f32
    %220 = vector.shape_cast %218 : vector<1x512xi1> to vector<1x512xi1>
    %221 = vector.broadcast %220 : vector<1x512xi1> to vector<8x512xi1>
    %222 = vector.broadcast %cst_89 : f32 to vector<8x512xf32>
    %223 = arith.select %221, %219, %222 : vector<8x512xi1>, vector<8x512xf32>
    %224 = vector.extract_strided_slice %47 {offsets = [0, 7], sizes = [8, 1], strides = [1, 1]} : vector<8x9xf32> to vector<8x1xf32>
    %225 = vector.broadcast %224 : vector<8x1xf32> to vector<8x512xf32>
    %226 = arith.mulf %223, %225 : vector<8x512xf32>
    %227 = arith.addf %208, %226 : vector<8x512xf32>
    %c1_i32_90 = arith.constant 1 : i32
    %228 = vector.broadcast %c1_i32_90 : i32 to vector<1x512xi32>
    %229 = arith.addi %4, %228 : vector<1x512xi32>
    %c0_i32_91 = arith.constant 0 : i32
    %230 = vector.broadcast %c0_i32_91 : i32 to vector<1x512xi32>
    %231 = arith.cmpi sge, %229, %230 : vector<1x512xi32>
    %232 = arith.andi %189, %231 : vector<1x512xi1>
    %c1_i32_92 = arith.constant 1 : i32
    %233 = vector.broadcast %c1_i32_92 : i32 to vector<1x512xi32>
    %234 = arith.addi %4, %233 : vector<1x512xi32>
    %c16_i32_93 = arith.constant 16 : i32
    %235 = vector.broadcast %c16_i32_93 : i32 to vector<1x512xi32>
    %236 = arith.cmpi slt, %234, %235 : vector<1x512xi32>
    %237 = arith.andi %232, %236 : vector<1x512xi1>
    %c0_94 = arith.constant 0 : index
    %c145 = arith.constant 145 : index
    %238 = vector.load %arg14[%c0_94, %c145] : memref<8x768xf32, #tpu.memory_space<vmem>>, vector<8x512xf32>
    %cst_95 = arith.constant 0.000000e+00 : f32
    %239 = vector.shape_cast %237 : vector<1x512xi1> to vector<1x512xi1>
    %240 = vector.broadcast %239 : vector<1x512xi1> to vector<8x512xi1>
    %241 = vector.broadcast %cst_95 : f32 to vector<8x512xf32>
    %242 = arith.select %240, %238, %241 : vector<8x512xi1>, vector<8x512xf32>
    %243 = vector.extract_strided_slice %47 {offsets = [0, 8], sizes = [8, 1], strides = [1, 1]} : vector<8x9xf32> to vector<8x1xf32>
    %244 = vector.broadcast %243 : vector<8x1xf32> to vector<8x512xf32>
    %245 = arith.mulf %242, %244 : vector<8x512xf32>
    %246 = arith.addf %227, %245 : vector<8x512xf32>
    %c0_96 = arith.constant 0 : index
    %c0_97 = arith.constant 0 : index
    %c0_98 = arith.constant 0 : index
    %247 = vector.load %arg8[%c0_96, %c0_97, %c0_98] : memref<1x8x1xf32, #tpu.memory_space<vmem>>, vector<1x8x1xf32>
    %248 = vector.shape_cast %247 : vector<1x8x1xf32> to vector<8x1xf32>
    %c0_99 = arith.constant 0 : index
    %c0_100 = arith.constant 0 : index
    %c0_101 = arith.constant 0 : index
    %249 = vector.load %arg9[%c0_99, %c0_100, %c0_101] : memref<1x8x1xf32, #tpu.memory_space<vmem>>, vector<1x8x1xf32>
    %250 = vector.shape_cast %249 : vector<1x8x1xf32> to vector<8x1xf32>
    %cst_102 = arith.constant dense<0.000000e+00> : vector<8xf32>
    %251 = vector.multi_reduction <add>, %246, %cst_102 [1] : vector<8x512xf32> to vector<8xf32>
    %252 = vector.shape_cast %251 : vector<8xf32> to vector<8x1xf32>
    %cst_103 = arith.constant 5.120000e+02 : f32
    %253 = vector.broadcast %cst_103 : f32 to vector<8x1xf32>
    %254 = arith.divf %252, %253 : vector<8x1xf32>
    %255 = vector.broadcast %254 : vector<8x1xf32> to vector<8x512xf32>
    %256 = arith.subf %246, %255 : vector<8x512xf32>
    %257 = vector.broadcast %254 : vector<8x1xf32> to vector<8x512xf32>
    %258 = arith.subf %246, %257 : vector<8x512xf32>
    %259 = arith.mulf %256, %258 : vector<8x512xf32>
    %cst_104 = arith.constant dense<0.000000e+00> : vector<8xf32>
    %260 = vector.multi_reduction <add>, %259, %cst_104 [1] : vector<8x512xf32> to vector<8xf32>
    %261 = vector.shape_cast %260 : vector<8xf32> to vector<8x1xf32>
    %cst_105 = arith.constant 5.120000e+02 : f32
    %262 = vector.broadcast %cst_105 : f32 to vector<8x1xf32>
    %263 = arith.divf %261, %262 : vector<8x1xf32>
    %cst_106 = arith.constant 9.99999974E-6 : f32
    %264 = vector.broadcast %cst_106 : f32 to vector<8x1xf32>
    %265 = arith.addf %263, %264 : vector<8x1xf32>
    %266 = math.rsqrt %265 : vector<8x1xf32>
    %267 = vector.broadcast %254 : vector<8x1xf32> to vector<8x512xf32>
    %268 = arith.subf %246, %267 : vector<8x512xf32>
    %269 = arith.mulf %266, %248 : vector<8x1xf32>
    %270 = vector.broadcast %269 : vector<8x1xf32> to vector<8x512xf32>
    %271 = arith.mulf %268, %270 : vector<8x512xf32>
    %272 = vector.broadcast %250 : vector<8x1xf32> to vector<8x512xf32>
    %273 = arith.addf %271, %272 : vector<8x512xf32>
    %cst_107 = arith.constant 0.000000e+00 : f32
    %274 = vector.broadcast %cst_107 : f32 to vector<8x512xf32>
    %275 = arith.maximumf %273, %274 : vector<8x512xf32>
    %cst_108 = arith.constant 6.000000e+00 : f32
    %276 = vector.broadcast %cst_108 : f32 to vector<8x512xf32>
    %277 = arith.minimumf %275, %276 : vector<8x512xf32>
    %c0_109 = arith.constant 0 : index
    %c0_110 = arith.constant 0 : index
    %278 = vector.load %arg15[%c0_109, %c0_110] : memref<4x512xf32, #tpu.memory_space<vmem>>, vector<4x512xf32>
    %c0_111 = arith.constant 0 : index
    %c0_112 = arith.constant 0 : index
    %c0_113 = arith.constant 0 : index
    %279 = vector.load %arg10[%c0_111, %c0_112, %c0_113] : memref<1x4x8xbf16, #tpu.memory_space<vmem>>, vector<1x4x8xbf16>
    %280 = vector.shape_cast %279 : vector<1x4x8xbf16> to vector<4x8xbf16>
    %281 = arith.truncf %277 : vector<8x512xf32> to vector<8x512xbf16>
    %cst_114 = arith.constant dense<0.000000e+00> : vector<4x512xf32>
    %282 = tpu.matmul %280, %281, %cst_114 {dimension_numbers = #tpu.dot_dimension_numbers<[1], [0], [0], [1], [0, 0, 1, 1], [], []>} : vector<4x8xbf16>, vector<8x512xbf16>, vector<4x512xf32> -> vector<4x512xf32>
    %283 = arith.addf %278, %282 : vector<4x512xf32>
    %c0_115 = arith.constant 0 : index
    %c0_116 = arith.constant 0 : index
    %284 = vector.load %arg15[%c0_115, %c0_116] : memref<4x512xf32, #tpu.memory_space<vmem>>, vector<4x512xf32>
    tpu.vector_store %arg15[%c0_115, %c0_116], %283 {strides = array<i32>} : memref<4x512xf32, #tpu.memory_space<vmem>>, vector<4x512xf32>,
    %c2_i32 = arith.constant 2 : i32
    %285 = arith.cmpi eq, %arg0, %c2_i32 : i32
    %286 = arith.extui %285 : i1 to i32
    %c0_i32_117 = arith.constant 0 : i32
    %287 = arith.cmpi ne, %286, %c0_i32_117 : i32
    scf.if %287 {
      %c0_118 = arith.constant 0 : index
      %c0_119 = arith.constant 0 : index
      %288 = vector.load %arg15[%c0_118, %c0_119] : memref<4x512xf32, #tpu.memory_space<vmem>>, vector<4x512xf32>
      %c0_120 = arith.constant 0 : index
      %c0_121 = arith.constant 0 : index
      %289 = vector.load %arg11[%c0_120, %c0_121] : memref<4x1xf32, #tpu.memory_space<vmem>>, vector<4x1xf32>
      %c0_122 = arith.constant 0 : index
      %c0_123 = arith.constant 0 : index
      %290 = vector.load %arg12[%c0_122, %c0_123] : memref<4x1xf32, #tpu.memory_space<vmem>>, vector<4x1xf32>
      %cst_124 = arith.constant dense<0.000000e+00> : vector<4xf32>
      %291 = vector.multi_reduction <add>, %288, %cst_124 [1] : vector<4x512xf32> to vector<4xf32>
      %292 = vector.shape_cast %291 : vector<4xf32> to vector<4x1xf32>
      %cst_125 = arith.constant 5.120000e+02 : f32
      %293 = vector.broadcast %cst_125 : f32 to vector<4x1xf32>
      %294 = arith.divf %292, %293 : vector<4x1xf32>
      %295 = vector.broadcast %294 : vector<4x1xf32> to vector<4x512xf32>
      %296 = arith.subf %288, %295 : vector<4x512xf32>
      %297 = vector.broadcast %294 : vector<4x1xf32> to vector<4x512xf32>
      %298 = arith.subf %288, %297 : vector<4x512xf32>
      %299 = arith.mulf %296, %298 : vector<4x512xf32>
      %cst_126 = arith.constant dense<0.000000e+00> : vector<4xf32>
      %300 = vector.multi_reduction <add>, %299, %cst_126 [1] : vector<4x512xf32> to vector<4xf32>
      %301 = vector.shape_cast %300 : vector<4xf32> to vector<4x1xf32>
      %cst_127 = arith.constant 5.120000e+02 : f32
      %302 = vector.broadcast %cst_127 : f32 to vector<4x1xf32>
      %303 = arith.divf %301, %302 : vector<4x1xf32>
      %cst_128 = arith.constant 9.99999974E-6 : f32
      %304 = vector.broadcast %cst_128 : f32 to vector<4x1xf32>
      %305 = arith.addf %303, %304 : vector<4x1xf32>
      %306 = math.rsqrt %305 : vector<4x1xf32>
      %307 = vector.broadcast %294 : vector<4x1xf32> to vector<4x512xf32>
      %308 = arith.subf %288, %307 : vector<4x512xf32>
      %309 = arith.mulf %306, %289 : vector<4x1xf32>
      %310 = vector.broadcast %309 : vector<4x1xf32> to vector<4x512xf32>
      %311 = arith.mulf %308, %310 : vector<4x512xf32>
      %312 = vector.broadcast %290 : vector<4x1xf32> to vector<4x512xf32>
      %313 = arith.addf %311, %312 : vector<4x512xf32>
      %c0_129 = arith.constant 0 : index
      %c0_130 = arith.constant 0 : index
      %314 = vector.load %arg1[%c0_129, %c0_130] : memref<4x512xf32, #tpu.memory_space<vmem>>, vector<4x512xf32>
      %315 = arith.addf %313, %314 : vector<4x512xf32>
      %c0_131 = arith.constant 0 : index
      %c0_132 = arith.constant 0 : index
      %316 = vector.load %arg13[%c0_131, %c0_132] : memref<4x512xf32, #tpu.memory_space<vmem>>, vector<4x512xf32>
      tpu.vector_store %arg13[%c0_131, %c0_132], %315 {strides = array<i32>} : memref<4x512xf32, #tpu.memory_space<vmem>>, vector<4x512xf32>,
    } else {
    }
    return
  }
  func.func @transform_0(%arg0: i32) -> (i32, i32) {
    %c0_i32 = arith.constant 0 : i32
    %c0_i32_0 = arith.constant 0 : i32
    %c0_i32_1 = arith.constant 0 : i32
    return %c0_i32, %c0_i32_0 : i32, i32
  }
  func.func @transform_1(%arg0: i32) -> (i32, i32) {
    %c0_i32 = arith.constant 0 : i32
    %c0_i32_0 = arith.constant 0 : i32
    %c0_i32_1 = arith.constant 0 : i32
    return %c0_i32, %c0_i32_0 : i32, i32
  }
  func.func @transform_2(%arg0: i32) -> (i32, i32) {
    %c0_i32 = arith.constant 0 : i32
    %c0_i32_0 = arith.constant 0 : i32
    %c0_i32_1 = arith.constant 0 : i32
    return %c0_i32, %c0_i32_0 : i32, i32
  }
  func.func @transform_3(%arg0: i32) -> (i32, i32, i32) {
    %c0_i32 = arith.constant 0 : i32
    %c0_i32_0 = arith.constant 0 : i32
    %c0_i32_1 = arith.constant 0 : i32
    return %arg0, %c0_i32, %c0_i32_0 : i32, i32, i32
  }
  func.func @transform_4(%arg0: i32) -> (i32, i32, i32) {
    %c0_i32 = arith.constant 0 : i32
    %c0_i32_0 = arith.constant 0 : i32
    %c0_i32_1 = arith.constant 0 : i32
    return %arg0, %c0_i32, %c0_i32_0 : i32, i32, i32
  }
  func.func @transform_5(%arg0: i32) -> (i32, i32, i32) {
    %c0_i32 = arith.constant 0 : i32
    %c0_i32_0 = arith.constant 0 : i32
    %c0_i32_1 = arith.constant 0 : i32
    return %arg0, %c0_i32, %c0_i32_0 : i32, i32, i32
  }
  func.func @transform_6(%arg0: i32) -> (i32, i32, i32) {
    %c0_i32 = arith.constant 0 : i32
    %c0_i32_0 = arith.constant 0 : i32
    %c0_i32_1 = arith.constant 0 : i32
    return %arg0, %c0_i32, %c0_i32_0 : i32, i32, i32
  }
  func.func @transform_7(%arg0: i32) -> (i32, i32, i32) {
    %c0_i32 = arith.constant 0 : i32
    %c0_i32_0 = arith.constant 0 : i32
    %c0_i32_1 = arith.constant 0 : i32
    return %arg0, %c0_i32, %c0_i32_0 : i32, i32, i32
  }
  func.func @transform_8(%arg0: i32) -> (i32, i32, i32) {
    %c0_i32 = arith.constant 0 : i32
    %c0_i32_0 = arith.constant 0 : i32
    %c0_i32_1 = arith.constant 0 : i32
    return %arg0, %c0_i32, %c0_i32_0 : i32, i32, i32
  }
  func.func @transform_9(%arg0: i32) -> (i32, i32, i32) {
    %c0_i32 = arith.constant 0 : i32
    %c0_i32_0 = arith.constant 0 : i32
    %c0_i32_1 = arith.constant 0 : i32
    return %arg0, %c0_i32, %c0_i32_0 : i32, i32, i32
  }
  func.func @transform_10(%arg0: i32) -> (i32, i32) {
    %c0_i32 = arith.constant 0 : i32
    %c0_i32_0 = arith.constant 0 : i32
    %c0_i32_1 = arith.constant 0 : i32
    return %c0_i32, %c0_i32_0 : i32, i32
  }
  func.func @transform_11(%arg0: i32) -> (i32, i32) {
    %c0_i32 = arith.constant 0 : i32
    %c0_i32_0 = arith.constant 0 : i32
    %c0_i32_1 = arith.constant 0 : i32
    return %c0_i32, %c0_i32_0 : i32, i32
  }
  func.func @transform_12(%arg0: i32) -> (i32, i32) {
    %c0_i32 = arith.constant 0 : i32
    %c0_i32_0 = arith.constant 0 : i32
    %c0_i32_1 = arith.constant 0 : i32
    return %c0_i32, %c0_i32_0 : i32, i32
  }
}

</mosaic_0001>

<bundles_post_ra>
// kernel: tpu_custom_call.1
= control target key start
LH: loop header
LB: loop body
LE: loop exit
PB: predicated region body
PF: predicated region fallthrough
CT: control target
= control target key end

     0   :  { %s2713_s0 = inlined_call_operand.vmem [shape: f32[4,512], index: 0, kind: input, shape index: {}]   ;;  %s2714_s1 = inlined_call_operand.vmem [shape: s32[1,512], index: 1, kind: input, shape index: {}]   ;;  %s2715_s2 = inlined_call_operand.vmem [shape: s32[1,512], index: 2, kind: input, shape index: {}]   ;;  %s2716_s3 = inlined_call_operand.vmem [shape: bf16[3,8,4], index: 3, kind: input, shape index: {}]   ;;  %s2717_s4 = inlined_call_operand.vmem [shape: f32[3,8,1], index: 4, kind: input, shape index: {}]   ;;  %s2718_s5 = inlined_call_operand.vmem [shape: f32[3,8,1], index: 5, kind: input, shape index: {}]   ;;  %s2719_s6 = inlined_call_operand.vmem [shape: f32[3,8,9], index: 6, kind: input, shape index: {}]   ;;  %s2720_s7 = inlined_call_operand.vmem [shape: f32[3,8,1], index: 7, kind: input, shape index: {}]   ;;  %s2721_s8 = inlined_call_operand.vmem [shape: f32[3,8,1], index: 8, kind: input, shape index: {}]   ;;  %s2722_s9 = inlined_call_operand.vmem [shape: bf16[3,4,8], index: 9, kind: input, shape index: {}]   ;;  %s2723_s10 = inlined_call_operand.vmem [shape: f32[4,1], index: 10, kind: input, shape index: {}]   ;;  %s2724_s11 = inlined_call_operand.vmem [shape: f32[4,1], index: 11, kind: input, shape index: {}]   ;;  %s2725_s12 = inlined_call_operand.hbm [shape: f32[4,512], index: 12, kind: output, shape index: {}]  }
   0x1   :  { %2742 = sst [smem:[#allocation18_spill]] %s2716_s3 }
   0x2   :  { %2743 = sst [smem:[#allocation19_spill]] %s2724_s11 }
   0x3   :  { %2744 = sst [smem:[#allocation20_spill]] %s2725_s12 }
   0x4   :  { %17 = vsyncpa [#allocation5], 0  ;;  %s1808_s21 = smov 0  }
   0x5 LB: > { %2745 = sst [smem:[#allocation7_spill]] %s1719_s21  ;;  %s1814_s22 = sadd.s32 4294967295, %s1719_s21   ;;  %s1719_s21 = sphi %s1808_s21, %s23_s21  }
   0x6   : > { %p1602_p0 = scmp.ge.s32.totalorder %s1719_s21, 1  ;;  %p411_p1 = scmp.lt.s32.totalorder %s1719_s21, 4 }
   0x8   : > { %p412_p2 = pnand %p1602_p0, %p411_p1 }
   0xa   : > { %415 = sbr.rel (%p412_p2) target bundleno = 2090 (0x82a), region = 68 }
  0x11   : > { %p471_p3 = scmp.lt.s32.totalorder %s1814_s22, 2  ;;  %s2746_s3 = sld [smem:[#allocation18_spill]] }
  0x12   : > { %p1610_p4 = scmp.ne.s32.totalorder %s1814_s22, 0 }
  0x13   : > { %s472_s23 = scalar_select %p471_p3, %s1814_s22, 2 }
  0x14   : > { %503 = sbr.rel (%p1610_p4) target bundleno = 27 (0x1b), region = 72  ;;  %v1721_v0 = vmov (!%p1610_p4), 0.0  }
  0x15   : > { %s1603_s24 = sshll.u32 %s472_s23, 2  ;;  %s1820_s25 = sshll.u32 %s472_s23, 3  ;;  %504 = vst [vmem:[#allocation3] sm:$0xff] (!%p1610_p4), %v1721_v0  ;;  %505 = vst [vmem:[#allocation3 + $0x8] sm:$0xff] (!%p1610_p4), %v1721_v0 }
  0x16   : > { %s478_s13 = scalar_lea.vmem %s2717_s4, %s1820_s25  ;;  %s482_s16 = scalar_lea.vmem %s2718_s5, %s1820_s25 }
  0x17   : > { %s1825_s28 = scalar_lea.vmem %s2746_s3, %s1603_s24  ;;  %s486_s19 = scalar_lea.vmem %s2719_s6, %s1820_s25 }
  0x18   : > { %s490_s27 = scalar_lea.vmem %s2720_s7, %s1820_s25  ;;  %s494_s24 = scalar_lea.vmem %s2721_s8, %s1820_s25 }
  0x19   : > { %s1609_s3 = sshll.u32 %s472_s23, 1 }
  0x1a   : > { %s1850_s30 = scalar_lea.vmem %s2722_s9, %s1609_s3 }
  0x1b PF: > { %v508_v1 = vld [vmem:[%s2713_s0] sm:$0xff]  ;;  %vm525_vm0 = vcmask 1041408   ;;  %v509_v2 = vld [vmem:[%s2713_s0 + $0x8] sm:$0xff]  ;;  %v2728_v7 = vmov 0   ;;  %vm521_vm1 = vcmask 31744   ;;  %v1723_v26 = vmov 1  }
  0x1c   : > { %v512_v3 = vcombine.high %v508_v1, %v508_v1  ;;  %v513_v4 = vcombine.high %v509_v2, %v509_v2  ;;  %v516_v5 = vpack.c.bf16 %v508_v1, %v508_v1  ;;  %v518_v6 = vpack.c.bf16 %v509_v2, %v509_v2  ;;  %570 = vmatprep.mubr.bf16.mxu0 %v2728_v7  ;;  %v520_v12 = vld [vmem:[%s1825_s28] sm:$0xf]  ;;  %s1727_s17 = smov 17   ;;  %s1730_s18 = smov 15  }
  0x1d   : > { %611 = vmatprep.mubr.bf16.mxu1 %v2728_v7  ;;  %1660 = vset.pattern.permute.xlu1 %v2728_v7  ;;  %v621_v24 = vld [vmem:[%s482_s16] sm:$0xff]  ;;  %v1724_v27 = vmov 2   ;;  %v1725_v28 = vmov 3   ;;  %v1726_v29 = vmov 0.0   ;;  %v1728_v30 = vmov 4   ;;  %s1729_s16 = smov 16  }
  0x1e   : > { %v517_v8 = vpack.c.bf16 %v512_v3, %v512_v3  ;;  %v519_v9 = vpack.c.bf16 %v513_v4, %v513_v4  ;;  %v527_v10 = vsel %vm525_vm0, %v516_v5, 0  ;;  %v533_v11 = vsel %vm525_vm0, %v518_v6, 0  ;;  %657 = vperm.xlu1 %1660, %v621_v24   ;;  %v678_v25 = vld [vmem:[%s486_s19] sm:$0xff]  ;;  %s1731_s19 = smov 1   ;;  %s1736_s29 = smov 127  }
  0x1f   : > { %v1732_v44 = vmov 5   ;;  %v1733_v45 = vmov 6   ;;  %v1734_v46 = vmov 7   ;;  %v1735_v47 = vmov 8   ;;  %v620_v51 = vld [vmem:[%s478_s13] sm:$0xff]  ;;  %s1737_s14 = smov 112  }
  0x20   : > { %1611 = vmatprep.subr.msk.bf16.mxu0 %vm525_vm0, %v517_v8  ;;  %1613 = vmatprep.subr.msk.bf16.mxu1 %vm525_vm0, %v519_v9  ;;  %s1738_s15 = smov 113   ;;  %s1739_s13 = smov 111   ;;  %vm2737_vm2 = vcmask 138240  }
  0x21   : > { %539 = vmatpush1.bf16.msra.mxu0 %v527_v10  ;;  %580 = vmatpush1.bf16.msra.mxu1 %v533_v11  ;;  %p1619_p5 = scmp.ne.s32.totalorder %s1814_s22, 2 }
  0x22   : > { %1661 = vset.pattern.permute.xlu1 %v1723_v26  ;;  %1665 = vset.pattern.permute.xlu0 %v1732_v44 }
  0x23   : > { %804 = vperm.xlu1 %1661, %v678_v25  }
  0x24   : > { %1612 = vmatmul.mubr.msk.bf16.vlgmr.msra.gmra.mrb[0].mxu0 %vm521_vm1, %v520_v12  ;;  %1614 = vmatmul.mubr.msk.bf16.vlgmr.msra.gmra.mrb[0].mxu1 %vm521_vm1, %v520_v12 }
  0x25   : > { %1329 = vmatprep.mubr.bf16.mxu0 %v2728_v7  ;;  %1370 = vmatprep.mubr.bf16.mxu1 %v2728_v7 }
  0x27   : > { %1662 = vset.pattern.permute.xlu1 %v1724_v27 }
  0x28   : > { %865 = vperm.xlu1 %1662, %v678_v25  }
  0x2c   : > { %1663 = vset.pattern.permute.xlu1 %v1725_v28 }
  0x2d   : > { %926 = vperm.xlu1 %1663, %v678_v25  }
  0x31   : > { %719 = vrot.lane.b32.xlu1 %v1726_v29, %s1727_s17 }
  0x32   : > { %1664 = vset.pattern.permute.xlu1 %v1728_v30  ;;  %v506_v30 = vld [vmem:[%s2714_s1] sm:$0xf] }
  0x33   : > { %vm876_vm3 = vcmp.ge.s32.totalorder %v506_v30, 0  ;;  %vm877_vm4 = vcmp.lt.s32.totalorder %v506_v30, 16 }
  0x34   : > { %vm2033_vm6 = vmand %vm876_vm3, %vm877_vm4 }
  0x35   : > { %780 = vrot.lane.b32.xlu1 %v1726_v29, %s1729_s16 }
  0x39   : > { %965 = vperm.xlu1 %1664, %v678_v25  }
  0x3d   : > { %1670 = vset.pattern.permute.xlu1 %v2728_v7 }
  0x3e   : > { %841 = vrot.lane.b32.xlu1 %v1726_v29, %s1730_s18 }
  0x42   : > { %902 = vrot.lane.b32.xlu1 %v1726_v29, %s1731_s19 }
  0x9d   : > { %v658_v54 = vpop.permute.xlu1 %657 }
  0xa2   : > { %v1900_v55 = vpop.permute.xlu1 %804 }
  0xa7   : > { %v1902_v56 = vpop.permute.xlu1 %865 }
  0xac   : > { %v1904_v57 = vpop.permute.xlu1 %926 }
  0xb0   : > { %v1906_v58 = vpop.permute.xlu1 %719 }
  0xb4   : > { %v1908_v59 = vpop.permute.xlu1 %780 }
  0xb8   : > { %v1910_v60 = vpop.permute.xlu1 %965 }
  0xbc   : > { %v1912_v61 = vpop.permute.xlu1 %841 }
  0xc0   : > { %v1914_v62 = vpop.permute.xlu1 %902 }
  0xf7   : > { %v572_v13 = vpop.f32.mrb[0].mxu0  ;;  %v613_v14 = vpop.f32.mrb[0].mxu1 }
  0xf8   : > { %v574_v15 = vpop.f32.mrb[1].mxu0  ;;  %v615_v16 = vpop.f32.mrb[1].mxu1 }
  0xf9   : > { %v622_v17 = vadd.f32 %v574_v15, %v572_v13  ;;  %v576_v18 = vpop.f32.mrb[2].mxu0  ;;  %v617_v19 = vpop.f32.mrb[2].mxu1 }
  0xfa   : > { %v577_v20 = vpop.f32.mrb[3].mxu0  ;;  %v618_v21 = vpop.f32.mrb[3].mxu1 }
  0xfb   : > { %v623_v22 = vadd.f32 %v622_v17, %v613_v14 }
  0xfd   : > { %v624_v23 = vadd.f32 %v623_v22, %v615_v16 }
  0xff   : > { %625 = vadd.xlane.f32.xlu0 %v624_v23 }
 0x18c   : > { %v626_v31 = vpop.xlane.xlu0 %625 }
 0x18d   : > { %v628_v32 = vmul.f32 0.001953125, %v626_v31 }
 0x18f   : > { %v629_v33 = vsub.f32 %v572_v13, %v628_v32  ;;  %v630_v34 = vsub.f32 %v574_v15, %v628_v32  ;;  %v631_v35 = vsub.f32 %v613_v14, %v628_v32  ;;  %v1880_v36 = vsub.f32 %v615_v16, %v628_v32  ;;  %v2023_v32 = vld [vmem:[%s2715_s2] sm:$0xf] }
 0x190   : > { %vm755_vm5 = vcmp.ge.s32.totalorder %v2023_v32, 0  ;;  %vm757_vm9 = vcmp.lt.s32.totalorder %v2023_v32, 16 }
 0x191   : > { %v633_v37 = vmul.f32 %v629_v33, %v629_v33  ;;  %v634_v38 = vmul.f32 %v630_v34, %v630_v34  ;;  %v635_v39 = vmul.f32 %v631_v35, %v631_v35  ;;  %v636_v41 = vmul.f32 %v1880_v36, %v1880_v36  ;;  %vm937_vm10 = vmand %vm2033_vm6, %vm755_vm5 }
 0x192   : > { %vm2053_vm14 = vmand %vm937_vm10, %vm757_vm9 }
 0x193   : > { %v637_v40 = vadd.f32 %v634_v38, %v633_v37  ;;  %v2038_v38 = vadd.s32 1, %v2023_v32 }
 0x195   : > { %v638_v42 = vadd.f32 %v637_v40, %v635_v39  ;;  %vm2739_vm13 = vcmp.ge.s32.totalorder %v2038_v38, 0  ;;  %vm2731_vm3 = vcmp.lt.s32.totalorder %v2038_v38, 16 }
 0x197   : > { %v639_v43 = vadd.f32 %v638_v42, %v636_v41  ;;  %v694_v41 = vlaneseq }
 0x199   : > { %640 = vadd.xlane.f32.xlu0 %v639_v43  ;;  %v2065_v44 = vshrl.u32 %v694_v41, 7 }
 0x19b   : > { %2757 = vst [vmem:[#allocation14_spill] sm:$0xff] %v2065_v44 }
 0x1af   : > { %1033 = vperm.xlu0 %1665, %v678_v25  }
 0x1b3   : > { %1666 = vset.pattern.permute.xlu0 %v1733_v45 }
 0x1b4   : > { %1095 = vperm.xlu0 %1666, %v678_v25  }
 0x1b8   : > { %1667 = vset.pattern.permute.xlu0 %v1734_v46 }
 0x1b9   : > { %1153 = vperm.xlu0 %1667, %v678_v25  }
 0x1bd   : > { %1668 = vset.pattern.permute.xlu0 %v1735_v47  ;;  %v1044_v47 = vadd.s32 1, %v506_v30 }
 0x1be   : > { %1211 = vperm.xlu0 %1668, %v678_v25  }
 0x1c2   : > { %1669 = vset.pattern.permute.xlu0 %v2728_v7 }
 0x1c3   : > { %744 = vperm.xlu0 %1669, %v678_v25  }
 0x1c7   : > { %1017 = vrot.lane.b32.xlu0 %v1726_v29, %s1736_s29 }
 0x1cb   : > { %1137 = vrot.lane.b32.xlu0 %v1726_v29, %s1737_s14 }
 0x226   : > { %v641_v48 = vpop.xlane.xlu0 %640 }
 0x227   : > { %v642_v49 = vmul.f32 0.001953125, %v641_v48  ;;  %v2080_v48 = vsub.s32 0, %v2065_v44 }
 0x229   : > { %v643_v50 = vadd.f32 1e-05, %v642_v49  ;;  %v2083_v49 = vsub.s32 1, %v2065_v44 }
 0x22b   : > { %1673 = vrsqrt.f32 %v643_v50  ;;  %v2090_v50 = vsub.s32 2, %v2065_v44 }
 0x22e   : > { %v1986_v17 = vpop.permute.xlu0 %1033 }
 0x22f   : > { %2747 = vst [vmem:[#allocation8_spill] sm:$0xff] %v1986_v17 }
 0x233   : > { %v1988_v18 = vpop.permute.xlu0 %1095 }
 0x234   : > { %2748 = vst [vmem:[#allocation9_spill] sm:$0xff] %v1988_v18 }
 0x235   : > { %v1674_v52 = vpop.eup %1673 }
 0x236   : > { %v645_v53 = vmul.f32 %v1674_v52, %v620_v51  ;;  %v2093_v51 = vsub.s32 3, %v2065_v44  ;;  %v939_v52 = vsel %vm2053_vm14, 1, %v2728_v7 }
 0x238   : > { %648 = vperm.xlu1 %1670, %v645_v53   ;;  %v1990_v19 = vpop.permute.xlu0 %1153 }
 0x239   : > { %2749 = vst [vmem:[#allocation10_spill] sm:$0xff] %v1990_v19 }
 0x23c   : > { %1079 = vrot.lane.b32.xlu1 %v1726_v29, %s1738_s15 }
 0x23d   : > { %v1994_v21 = vpop.permute.xlu0 %1211 }
 0x23e   : > { %2751 = vst [vmem:[#allocation12_spill] sm:$0xff] %v1994_v21 }
 0x242   : > { %v1998_v23 = vpop.permute.xlu0 %744 }
 0x246   : > { %v2007_v26 = vpop.permute.xlu0 %1017 }
 0x247   : > { %2752 = vst [vmem:[#allocation13_spill] sm:$0xff] %v2007_v26 }
 0x2b7   : > { %v649_v63 = vpop.permute.xlu1 %648 }
 0x2b8   : > { %v651_v0 = vmul.f32 %v649_v63, %v629_v33  ;;  %v652_v1 = vmul.f32 %v649_v63, %v630_v34  ;;  %v653_v2 = vmul.f32 %v649_v63, %v631_v35  ;;  %v654_v13 = vmul.f32 %v649_v63, %v1880_v36 }
 0x2b9   : > { %v679_v33 = vadd.s32 4294967295, %v506_v30  ;;  %v2030_v36 = vadd.s32 4294967295, %v2023_v32 }
 0x2ba   : > { %v660_v3 = vadd.f32 %v658_v54, %v651_v0  ;;  %v661_v4 = vadd.f32 %v658_v54, %v652_v1  ;;  %v662_v5 = vadd.f32 %v658_v54, %v653_v2  ;;  %v663_v14 = vadd.f32 %v658_v54, %v654_v13 }
 0x2bb   : > { %v1992_v20 = vpop.permute.xlu1 %1079  ;;  %vm680_vm7 = vcmp.ge.s32.totalorder %v679_v33, 0  ;;  %vm681_vm8 = vcmp.lt.s32.totalorder %v679_v33, 16  ;;  %vm2733_vm12 = vcmp.ge.s32.totalorder %v2030_v36, 0  ;;  %vm2730_vm0 = vcmp.lt.s32.totalorder %v2030_v36, 16 }
 0x2bc   : > { %v664_v6 = vmax.f32 %v660_v3, 0.0  ;;  %v666_v8 = vmax.f32 %v662_v5, 0.0  ;;  %v665_v9 = vmax.f32 %v661_v4, 0.0  ;;  %v667_v15 = vmax.f32 %v663_v14, 0.0  ;;  %2750 = vst [vmem:[#allocation11_spill] sm:$0xff] %v1992_v20  ;;  %vm682_vm11 = vmand %vm680_vm7, %vm681_vm8 }
 0x2bd   : > { %vm685_vm15 = vmand %vm682_vm11, %vm2733_vm12  ;;  %v943_v2 = vrot.slane %v939_v52, %v2080_v48  ;;  %v947_v3 = vrot.slane %v939_v52, %v2083_v49  ;;  %v951_v5 = vrot.slane %v939_v52, %v2090_v50 }
 0x2be   : > { %v1916_v10 = vmin.f32 %v664_v6, 6.0  ;;  %v1918_v11 = vmin.f32 %v666_v8, 6.0  ;;  %v1924_v12 = vmin.f32 %v665_v9, 6.0  ;;  %v1947_v16 = vmin.f32 %v667_v15, 6.0  ;;  %vm817_vm1 = vmand %vm682_vm11, %vm2739_vm13 }
 0x2bf   : > { %vm756_vm4 = vmand %vm682_vm11, %vm755_vm5  ;;  %v955_v6 = vrot.slane %v939_v52, %v2093_v51 }
 0x2c0   : > { %786 = vrot.lane.b32.xlu0 %v1918_v11, %s1729_s16  ;;  %721 = vrot.lane.b32.xlu1 %v1916_v10, %s1727_s17  ;;  %vm687_vm7 = vmand %vm685_vm15, %vm2730_vm0 }
 0x2c1   : > { %vm819_vm8 = vmand %vm817_vm1, %vm2731_vm3  ;;  %v2099_v53 = vsel %vm687_vm7, 1, %v2728_v7  ;;  %vm1045_vm1 = vcmp.ge.s32.totalorder %v1044_v47, 0  ;;  %vm2740_vm7 = vcmask 130048  }
 0x2c2   : > { %vm758_vm10 = vmand %vm756_vm4, %vm757_vm9  ;;  %v2104_v63 = vsel %vm819_vm8, 1, %v2728_v7  ;;  %vm1046_vm4 = vcmp.lt.s32.totalorder %v1044_v47, 16  ;;  %v697_v4 = vrot.slane %v2099_v53, %v2080_v48  ;;  %v701_v30 = vrot.slane %v2099_v53, %v2083_v49 }
 0x2c3   : > { %vm879_vm11 = vmand %vm2033_vm6, %vm2733_vm12  ;;  %v2107_v0 = vsel %vm758_vm10, 1, %v2728_v7  ;;  %v824_v8 = vrot.slane %v2104_v63, %v2080_v48  ;;  %vm2136_vm8 = vcmp.eq.s32.totalorder %v943_v2, 1  ;;  %vm2140_vm10 = vcmp.eq.s32.totalorder %v947_v3, 1 }
 0x2c4   : > { %843 = vrot.lane.b32.xlu0 %v1916_v10, %s1730_s18  ;;  %723 = vrot.lane.b32.xlu1 %v1924_v12, %s1727_s17  ;;  %vm880_vm15 = vmand %vm879_vm11, %vm2730_vm0  ;;  %v763_v9 = vrot.slane %v2107_v0, %v2080_v48  ;;  %v767_v33 = vrot.slane %v2107_v0, %v2083_v49  ;;  %vm2144_vm11 = vcmp.eq.s32.totalorder %v697_v4, 1  ;;  %v771_v19 = vrot.slane %v2107_v0, %v2090_v50 }
 0x2c5   : > { %v2124_v13 = vsel %vm880_vm15, 1, %v2728_v7  ;;  %vm2126_vm14 = vmand %vm1045_vm1, %vm1046_vm4  ;;  %vm2160_vm1 = vcmp.eq.s32.totalorder %v951_v5, 1  ;;  %vm2164_vm4 = vcmp.eq.s32.totalorder %v955_v6, 1  ;;  %vm2168_vm3 = vcmp.eq.s32.totalorder %v824_v8, 1 }
 0x2c6   : > { %v885_v52 = vrot.slane %v2124_v13, %v2080_v48  ;;  %vm2156_vm15 = vmand %vm2126_vm14, %vm755_vm5  ;;  %vm2172_vm12 = vcmp.eq.s32.totalorder %v763_v9, 1  ;;  %vm2180_vm5 = vcmp.eq.s32.totalorder %v701_v30, 1  ;;  %vm2187_vm0 = vcmp.eq.s32.totalorder %v767_v33, 1 }
 0x2c7   : > { %v960_v9 = vsel %vm2136_vm8, %v1916_v10, 0.0  ;;  %v705_v33 = vrot.slane %v2099_v53, %v2090_v50  ;;  %v828_v17 = vrot.slane %v2104_v63, %v2083_v49  ;;  %vm2213_vm8 = vmand %vm2156_vm15, %vm757_vm9  ;;  %v962_v37 = vsel %vm2160_vm1, %v1918_v11, 0.0 }
 0x2c8   : > { %847 = vrot.lane.b32.xlu0 %v1918_v11, %s1730_s18  ;;  %782 = vrot.lane.b32.xlu1 %v1916_v10, %s1729_s16  ;;  %v832_v42 = vrot.slane %v2104_v63, %v2090_v50  ;;  %vm2787_vm9 = vcmp.ge.s32.totalorder %v2030_v36, 0  ;;  %vm2790_vm1 = vcmp.lt.s32.totalorder %v2038_v38, 16  ;;  %v2793_v4 = vmov 0  }
 0x2c9   : > { %vm2236_vm15 = vmand %vm2126_vm14, %vm2787_vm9  ;;  %vm2299_vm9 = vcmp.eq.s32.totalorder %v771_v19, 1 }
 0x2cc   : > { %904 = vrot.lane.b32.xlu0 %v1916_v10, %s1731_s19  ;;  %784 = vrot.lane.b32.xlu1 %v1924_v12, %s1729_s16 }
 0x2d0   : > { %1011 = vrot.lane.b32.xlu0 %v1924_v12, %s1736_s29  ;;  %725 = vrot.lane.b32.xlu1 %v1918_v11, %s1727_s17 }
 0x2d4   : > { %1073 = vrot.lane.b32.xlu0 %v1924_v12, %s1738_s15  ;;  %845 = vrot.lane.b32.xlu1 %v1924_v12, %s1730_s18 }
 0x2d8   : > { %1129 = vrot.lane.b32.xlu0 %v1916_v10, %s1737_s14  ;;  %727 = vrot.lane.b32.xlu1 %v1947_v16, %s1727_s17 }
 0x2dc   : > { %1133 = vrot.lane.b32.xlu0 %v1918_v11, %s1737_s14  ;;  %788 = vrot.lane.b32.xlu1 %v1947_v16, %s1729_s16 }
 0x2e0   : > { %1135 = vrot.lane.b32.xlu0 %v1947_v16, %s1737_s14  ;;  %906 = vrot.lane.b32.xlu1 %v1924_v12, %s1731_s19 }
 0x2e4   : > { %1189 = vrot.lane.b32.xlu0 %v1924_v12, %s1739_s13  ;;  %849 = vrot.lane.b32.xlu1 %v1947_v16, %s1730_s18  ;;  %s2892_s18 = sld [smem:[#allocation19_spill]] (!%p1619_p5) }
 0x2e8   : > { %908 = vrot.lane.b32.xlu1 %v1918_v11, %s1731_s19  ;;  %1195 = vrot.lane.b32.xlu0 %v1726_v29, %s1739_s13  ;;  %v2013_v29 = vpop.permute.xlu0 %1137 }
 0x2ec   : > { %910 = vrot.lane.b32.xlu1 %v1947_v16, %s1731_s19 }
 0x2f0   : > { %1009 = vrot.lane.b32.xlu1 %v1916_v10, %s1736_s29 }
 0x2f4   : > { %1013 = vrot.lane.b32.xlu1 %v1918_v11, %s1736_s29 }
 0x2f8   : > { %1015 = vrot.lane.b32.xlu1 %v1947_v16, %s1736_s29 }
 0x2fc   : > { %1071 = vrot.lane.b32.xlu1 %v1916_v10, %s1738_s15 }
 0x300   : > { %1075 = vrot.lane.b32.xlu1 %v1918_v11, %s1738_s15 }
 0x304   : > { %1077 = vrot.lane.b32.xlu1 %v1947_v16, %s1738_s15 }
 0x308   : > { %1131 = vrot.lane.b32.xlu1 %v1924_v12, %s1737_s14 }
 0x30c   : > { %1187 = vrot.lane.b32.xlu1 %v1916_v10, %s1739_s13  ;;  %v709_v10 = vrot.slane %v2099_v53, %v2093_v51 }
 0x310   : > { %1191 = vrot.lane.b32.xlu1 %v1918_v11, %s1739_s13 }
 0x314   : > { %1193 = vrot.lane.b32.xlu1 %v1947_v16, %s1739_s13 }
 0x332   : > { %v1996_v22 = vpop.permute.xlu1 %721  ;;  %v2025_v34 = vpop.permute.xlu0 %786 }
 0x336   : > { %v2000_v24 = vpop.permute.xlu1 %723  ;;  %v2048_v40 = vpop.permute.xlu0 %843 }
 0x337   : > { %v2005_v25 = vsel %vm2737_vm2, %v1996_v22, %v2000_v24  ;;  %vm2198_vm2 = vmand %vm2033_vm6, %vm2739_vm13  ;;  %vm2784_vm6 = vcmask 138240   ;;  %vm2226_vm13 = vcmp.eq.s32.totalorder %v885_v52, 1  ;;  %v2247_v52 = vmul.f32 %v1910_v60, %v960_v9 }
 0x338   : > { %v730_v41 = vsel %vm2784_vm6, %v1906_v58, %v1996_v22  ;;  %v775_v58 = vrot.slane %v2107_v0, %v2093_v51  ;;  %v889_v0 = vrot.slane %v2124_v13, %v2083_v49  ;;  %v2270_v9 = vmul.f32 %v1910_v60, %v962_v37 }
 0x33a   : > { %v2009_v27 = vpop.permute.xlu1 %782  ;;  %v2071_v45 = vpop.permute.xlu0 %847  ;;  %2794 = vst [vmem:[#allocation15_spill] sm:$0xff] %v2270_v9 }
 0x33b   : > { %v791_v6 = vsel %vm2740_vm7, %v1908_v59, %v2009_v27  ;;  %v961_v59 = vsel %vm2140_vm10, %v1924_v12, 0.0  ;;  %v963_v12 = vsel %vm2164_vm4, %v1947_v16, 0.0  ;;  %vm2741_vm10 = vcmask 7168   ;;  %vm2253_vm4 = vmand %vm2198_vm2, %vm2790_vm1 }
 0x33c   : > { %v799_v16 = vsel %vm2172_vm12, %v791_v6, 0.0  ;;  %v2258_v3 = vmul.f32 %v1910_v60, %v961_v59  ;;  %v2267_v6 = vsel %vm2213_vm8, 1, %v2793_v4  ;;  %v2273_v30 = vmul.f32 %v1910_v60, %v963_v12 }
 0x33d   : > { %v738_v59 = vsel %vm2144_vm11, %v730_v41, 0.0  ;;  %vm2277_vm2 = vcmp.eq.s32.totalorder %v705_v33, 1  ;;  %vm2281_vm12 = vcmp.eq.s32.totalorder %v828_v17, 1  ;;  %vm2800_vm8 = vcmp.lt.s32.totalorder %v2030_v36, 16 }
 0x33e   : > { %v2011_v28 = vpop.permute.xlu1 %784  ;;  %v2109_v1 = vpop.permute.xlu0 %904  ;;  %2795 = vst [vmem:[#allocation16_spill] sm:$0xff] %v2273_v30  ;;  %vm2291_vm6 = vmand %vm2236_vm15, %vm2800_vm8  ;;  %vm2803_vm11 = vcmask 121856   ;;  %v807_v17 = vmul.f32 %v1900_v55, %v799_v16  ;;  %vm2303_vm1 = vcmp.eq.s32.totalorder %v832_v42, 1  ;;  %v836_v36 = vrot.slane %v2104_v63, %v2093_v51 }
 0x33f   : > { %v852_v47 = vsel %vm2803_vm11, %v1912_v61, %v2048_v40  ;;  %v2312_v37 = vsel %vm2253_vm4, 1, %v2793_v4  ;;  %v792_v61 = vsel %vm2740_vm7, %v2009_v27, %v2011_v28  ;;  %vm2317_vm15 = vcmp.eq.s32.totalorder %v775_v58, 1 }
 0x340   : > { %v893_v63 = vrot.slane %v2124_v13, %v2090_v50  ;;  %v747_v11 = vmul.f32 %v1998_v23, %v738_v59  ;;  %vm2330_vm4 = vcmp.eq.s32.totalorder %v889_v0, 1  ;;  %v897_v27 = vrot.slane %v2124_v13, %v2093_v51  ;;  %v2883_v0 = vld [vmem:[#allocation10_spill] sm:$0xff] }
 0x341   : > { %v2339_v58 = vsel %vm2291_vm6, 1, %v2793_v4  ;;  %v860_v2 = vsel %vm2168_vm3, %v852_v47, 0.0  ;;  %v913_v41 = vsel %vm2741_vm10, %v1914_v62, %v2109_v1  ;;  %vm2346_vm8 = vcmp.eq.s32.totalorder %v709_v10, 1  ;;  %vm2814_vm3 = vmmov %vm2803_vm11 }
 0x342   : > { %v2018_v31 = vpop.permute.xlu1 %725  ;;  %v2150_v7 = vpop.permute.xlu0 %1011  ;;  %v987_v59 = vrot.slane %v2312_v37, %v2080_v48  ;;  %v991_v13 = vrot.slane %v2312_v37, %v2083_v49  ;;  %v811_v60 = vadd.f32 %v807_v17, %v747_v11  ;;  %v800_v12 = vsel %vm2187_vm0, %v792_v61, 0.0 }
 0x343   : > { %vm2361_vm6 = vcmp.eq.s32.totalorder %v836_v36, 1  ;;  %v995_v10 = vrot.slane %v2312_v37, %v2090_v50  ;;  %vm2818_vm11 = vcmp.ge.s32.totalorder %v2038_v38, 0  ;;  %vm2378_vm0 = vcmp.eq.s32.totalorder %v893_v63, 1 }
 0x344   : > { %vm2371_vm7 = vmand %vm2126_vm14, %vm2818_vm11  ;;  %v999_v61 = vrot.slane %v2312_v37, %v2093_v51  ;;  %v1054_v14 = vrot.slane %v2339_v58, %v2080_v48  ;;  %v1058_v11 = vrot.slane %v2339_v58, %v2083_v49  ;;  %v868_v30 = vmul.f32 %v1902_v56, %v860_v2 }
 0x345   : > { %v921_v18 = vsel %vm2226_vm13, %v913_v41, 0.0  ;;  %vm2823_vm14 = vcmask 138240   ;;  %v808_v37 = vmul.f32 %v1900_v55, %v800_v12  ;;  %v1062_v32 = vrot.slane %v2339_v58, %v2090_v50 }
 0x346   : > { %v2027_v35 = vpop.permute.xlu1 %845  ;;  %v2260_v21 = vpop.permute.xlu0 %1073  ;;  %v1066_v41 = vrot.slane %v2339_v58, %v2093_v51  ;;  %vm2826_vm13 = vcmp.lt.s32.totalorder %v2038_v38, 16  ;;  %v872_v12 = vadd.f32 %v868_v30, %v811_v60  ;;  %vm2830_vm11 = vcmask 121856  }
 0x347   : > { %v853_v44 = vsel %vm2814_vm3, %v2048_v40, %v2027_v35  ;;  %v739_v40 = vsel %vm2180_vm5, %v2005_v25, 0.0  ;;  %v732_v25 = vsel %vm2823_vm14, %v2000_v24, %v2018_v31  ;;  %vm2402_vm5 = vcmp.eq.s32.totalorder %v897_v27, 1  ;;  %vm2414_vm3 = vmand %vm2371_vm7, %vm2826_vm13 }
 0x348   : > { %v861_v9 = vsel %vm2281_vm12, %v853_v44, 0.0  ;;  %v748_v26 = vmul.f32 %v1998_v23, %v739_v40  ;;  %vm2829_vm12 = vcmask 130048   ;;  %v854_v27 = vsel %vm2830_vm11, %v2027_v35, %v2071_v45 }
 0x349   : > { %v929_v38 = vmul.f32 %v1904_v57, %v921_v18  ;;  %v740_v58 = vsel %vm2277_vm2, %v732_v25, 0.0  ;;  %vm2831_vm7 = vmmov %vm2829_vm12  ;;  %v869_v30 = vmul.f32 %v1902_v56, %v861_v9  ;;  %vm2438_vm13 = vcmp.eq.s32.totalorder %v991_v13, 1 }
 0x34a   : > { %v2045_v39 = vpop.permute.xlu1 %727  ;;  %v2359_v47 = vpop.permute.xlu0 %1129  ;;  %v1112_v20 = vrot.slane %v2267_v6, %v2080_v48  ;;  %v812_v16 = vadd.f32 %v808_v37, %v748_v26  ;;  %v862_v13 = vsel %vm2303_vm1, %v854_v27, 0.0  ;;  %vm2834_vm2 = vmmov %vm2823_vm14  ;;  %v749_v18 = vmul.f32 %v1998_v23, %v740_v58 }
 0x34b   : > { %2815 = vst [vmem:[#allocation17_spill] sm:$0xff] %v2359_v47  ;;  %v733_v8 = vsel %vm2834_vm2, %v2018_v31, %v2045_v39  ;;  %vm2469_vm1 = vcmp.eq.s32.totalorder %v995_v10, 1  ;;  %v933_v31 = vadd.f32 %v929_v38, %v872_v12  ;;  %vm2494_vm2 = vcmp.eq.s32.totalorder %v1062_v32, 1 }
 0x34c   : > { %v741_v37 = vsel %vm2346_vm8, %v733_v8, 0.0  ;;  %v2853_v27 = vrot.slane %v2267_v6, %v2090_v50  ;;  %v2861_v47 = vrot.slane %v2267_v6, %v2093_v51 }
 0x34d   : > { %v972_v38 = vadd.f32 %v2247_v52, %v933_v31  ;;  %v2871_v31 = vld [vmem:[#allocation11_spill] sm:$0xff] }
 0x34e   : > { %v2060_v43 = vpop.permute.xlu1 %788  ;;  %v2436_v60 = vpop.permute.xlu0 %1133  ;;  %vm2515_vm14 = vcmp.eq.s32.totalorder %v2853_v27, 1 }
 0x34f   : > { %v794_v2 = vsel %vm2831_vm7, %v2025_v34, %v2060_v43  ;;  %v2449_v43 = vsel %vm2414_vm3, 1, %v2793_v4  ;;  %vm2840_vm3 = vcmask 7168   ;;  %vm2484_vm7 = vcmp.eq.s32.totalorder %v1058_v11, 1 }
 0x350   : > { %v802_v4 = vsel %vm2317_vm15, %v794_v2, 0.0  ;;  %vm2480_vm15 = vcmp.eq.s32.totalorder %v1054_v14, 1  ;;  %v1178_v2 = vrot.slane %v2449_v43, %v2090_v50 }
 0x351   : > { %v810_v24 = vmul.f32 %v1900_v55, %v802_v4 }
 0x352   : > { %v2075_v46 = vpop.permute.xlu1 %906  ;;  %v1136_v12 = vpop.permute.xlu0 %1135 }
 0x353   : > { %v914_v63 = vsel %vm2741_vm10, %v2109_v1, %v2075_v46  ;;  %v793_v1 = vsel %vm2829_vm12, %v2011_v28, %v2025_v34  ;;  %vm1019_vm10 = vcmask 1039360   ;;  %v1116_v34 = vrot.slane %v2267_v6, %v2083_v49 }
 0x354   : > { %v922_v44 = vsel %vm2330_vm4, %v914_v63, 0.0  ;;  %v801_v9 = vsel %vm2299_vm9, %v793_v1, 0.0  ;;  %vm2458_vm4 = vcmp.eq.s32.totalorder %v987_v59, 1  ;;  %vm2837_vm9 = vmmov %vm2830_vm11  ;;  %vm2476_vm11 = vcmp.eq.s32.totalorder %v999_v61, 1 }
 0x355   : > { %v930_v33 = vmul.f32 %v1904_v57, %v922_v44  ;;  %v809_v10 = vmul.f32 %v1900_v55, %v801_v9  ;;  %v873_v61 = vadd.f32 %v869_v30, %v812_v16  ;;  %vm2508_vm12 = vcmp.eq.s32.totalorder %v1066_v41, 1 }
 0x356   : > { %v2101_v54 = vpop.permute.xlu1 %849  ;;  %v750_v41 = vmul.f32 %v1998_v23, %v741_v37  ;;  %v1182_v44 = vrot.slane %v2449_v43, %v2093_v51  ;;  %v2858_v23 = vmov 0 }
 0x357   : > { %v855_v53 = vsel %vm2837_vm9, %v2071_v45, %v2101_v54  ;;  %v1170_v54 = vrot.slane %v2449_v43, %v2080_v48  ;;  %vm2498_vm9 = vcmp.eq.s32.totalorder %v1116_v34, 1  ;;  %v813_v32 = vadd.f32 %v809_v10, %v749_v18  ;;  %v1190_v10 = vpop.permute.xlu0 %1189 }
 0x358   : > { %v863_v48 = vsel %vm2361_vm6, %v855_v53, 0.0  ;;  %v934_v1 = vadd.f32 %v930_v33, %v873_v61  ;;  %vm2521_vm6 = vcmp.eq.s32.totalorder %v1112_v20, 1  ;;  %v814_v52 = vadd.f32 %v810_v24, %v750_v41 }
 0x359   : > { %v871_v30 = vmul.f32 %v1902_v56, %v863_v48  ;;  %v2880_v48 = vld [vmem:[#allocation9_spill] sm:$0xff] }
 0x35a   : > { %v2130_v15 = vpop.permute.xlu1 %908  ;;  %v973_v16 = vadd.f32 %v2258_v3, %v934_v1 }
 0x35b   : > { %v915_v39 = vsel %vm2840_vm3, %v2075_v46, %v2130_v15  ;;  %v870_v46 = vmul.f32 %v1902_v56, %v862_v13  ;;  %v875_v18 = vadd.f32 %v871_v30, %v814_v52 }
 0x35c   : > { %v923_v62 = vsel %vm2378_vm0, %v915_v39, 0.0  ;;  %vm2539_vm0 = vcmp.eq.s32.totalorder %v1170_v54, 1  ;;  %v2874_v54 = vld [vmem:[#allocation17_spill] sm:$0xff] }
 0x35d   : > { %v874_v17 = vadd.f32 %v870_v46, %v813_v32  ;;  %v2859_v23 = vsel %vm2539_vm0, 4294967295, %v2858_v23  ;;  %v931_v34 = vmul.f32 %v1904_v57, %v923_v62 }
 0x35e   : > { %v2178_v5 = vpop.permute.xlu1 %910 }
 0x35f   : > { %v916_v26 = vsel %vm2840_vm3, %v2130_v15, %v2178_v5  ;;  %v1174_v5 = vrot.slane %v2449_v43, %v2083_v49  ;;  %vm2860_vm3 = vcmask 916480   ;;  %v935_v35 = vadd.f32 %v931_v34, %v874_v17  ;;  %v2884_v17 = vld [vmem:[#allocation16_spill] sm:$0xff] }
 0x360   : > { %v924_v20 = vsel %vm2402_vm5, %v916_v26, 0.0  ;;  %v2545_v50 = vsel %vm2860_vm3, %v2436_v60, %v1136_v12  ;;  %vm2554_vm5 = vcmp.eq.s32.totalorder %v2861_v47, 1  ;;  %vm2864_vm8 = vmmov %vm2860_vm3  ;;  %vm2865_vm3 = vcmask 924672  }
 0x361   : > { %v2560_v9 = vsel %vm2864_vm8, %v1136_v12, %v2013_v29  ;;  %vm2568_vm0 = vcmp.eq.s32.totalorder %v1174_v5, 1  ;;  %v932_v51 = vmul.f32 %v1904_v57, %v924_v20  ;;  %v2868_v29 = vld [vmem:[#allocation13_spill] sm:$0xff]  ;;  %vm2869_vm8 = vmmov %vm2865_vm3  ;;  %v1150_v12 = vsel %vm2515_vm14, %v2545_v50, 0.0  ;;  %v2882_v5 = vld [vmem:[#allocation15_spill] sm:$0xff] }
 0x362   : > { %v2244_v22 = vpop.permute.xlu1 %1009  ;;  %v974_v41 = vadd.f32 %v2882_v5, %v935_v35  ;;  %vm2885_vm14 = vnez %v2859_v23 }
 0x363   : > { %v1020_v56 = vsel %vm1019_vm10, %v2244_v22, %v2150_v7  ;;  %v2866_v22 = vmov 0  ;;  %v936_v46 = vadd.f32 %v932_v51, %v875_v18  ;;  %v2888_v51 = vld [vmem:[#allocation12_spill] sm:$0xff] }
 0x364   : > { %v2867_v22 = vsel %vm2568_vm0, 4294967295, %v2866_v22  ;;  %v1028_v4 = vsel %vm2458_vm4, %v1020_v56, 0.0  ;;  %vm2870_vm0 = vcmask 916480   ;;  %vm2599_vm4 = vcmp.eq.s32.totalorder %v1178_v2, 1 }
 0x365   : > { %v975_v30 = vadd.f32 %v2884_v17, %v936_v46  ;;  %v1151_v56 = vsel %vm2554_vm5, %v2560_v9, 0.0 }
 0x366   : > { %v2327_v42 = vpop.permute.xlu1 %1013 }
 0x367   : > { %v1021_v49 = vsel %vm1019_vm10, %v2150_v7, %v2327_v42 }
 0x368   : > { %v1029_v6 = vsel %vm2438_vm13, %v1021_v49, 0.0  ;;  %vm2875_vm13 = vmmov %vm2870_vm0 }
 0x36a   : > { %v2382_v36 = vpop.permute.xlu1 %1015 }
 0x36b   : > { %v1022_v13 = vsel %vm1019_vm10, %v2327_v42, %v2382_v36  ;;  %v1023_v3 = vsel %vm1019_vm10, %v2382_v36, %v2868_v29  ;;  %vm2872_vm10 = vmmov %vm2865_vm3 }
 0x36c   : > { %v1030_v53 = vsel %vm2469_vm1, %v1022_v13, 0.0  ;;  %v1031_v40 = vsel %vm2476_vm11, %v1023_v3, 0.0  ;;  %vm2603_vm1 = vcmp.eq.s32.totalorder %v1182_v44, 1  ;;  %vm2881_vm11 = vcmask 908288   ;;  %v1196_v13 = vpop.permute.xlu0 %1195 }
 0x36d   : > { %v1158_v3 = vmul.f32 %v2883_v0, %v1150_v12 }
 0x36e   : > { %v2433_v28 = vpop.permute.xlu1 %1071 }
 0x36f   : > { %v1082_v42 = vsel %vm2869_vm8, %v2433_v28, %v2260_v21  ;;  %v2873_v28 = vld [vmem:[#allocation8_spill] sm:$0xff] }
 0x370   : > { %v1037_v39 = vmul.f32 %v2873_v28, %v1029_v6  ;;  %v1036_v61 = vmul.f32 %v2873_v28, %v1028_v4  ;;  %v1038_v24 = vmul.f32 %v2873_v28, %v1030_v53  ;;  %v1039_v14 = vmul.f32 %v2873_v28, %v1031_v40 }
 0x372   : > { %v1076_v63 = vpop.permute.xlu1 %1075  ;;  %v1041_v62 = vadd.f32 %v1037_v39, %v973_v16  ;;  %v1040_v44 = vadd.f32 %v1036_v61, %v972_v38  ;;  %v1042_v52 = vadd.f32 %v1038_v24, %v974_v41  ;;  %v1043_v47 = vadd.f32 %v1039_v14, %v975_v30 }
 0x373   : > { %v1083_v7 = vsel %vm2865_vm3, %v2260_v21, %v1076_v63 }
 0x374   : > { %v1091_v36 = vsel %vm2484_vm7, %v1083_v7, 0.0  ;;  %vm2889_vm7 = vmmov %vm2881_vm11 }
 0x375   : > { %v1099_v26 = vmul.f32 %v2880_v48, %v1091_v36 }
 0x376   : > { %v1078_v58 = vpop.permute.xlu1 %1077 }
 0x377   : > { %v1084_v33 = vsel %vm2865_vm3, %v1076_v63, %v1078_v58  ;;  %v1085_v21 = vsel %vm2872_vm10, %v1078_v58, %v2871_v31  ;;  %v1090_v63 = vsel %vm2480_vm15, %v1082_v42, 0.0  ;;  %v1103_v50 = vadd.f32 %v1099_v26, %v1041_v62 }
 0x378   : > { %v1092_v59 = vsel %vm2494_vm2, %v1084_v33, 0.0  ;;  %v1093_v32 = vsel %vm2508_vm12, %v1085_v21, 0.0  ;;  %v1098_v27 = vmul.f32 %v2880_v48, %v1090_v63  ;;  %vm2886_vm12 = vmmov %vm2881_vm11  ;;  %vm2887_vm15 = vnez %v2867_v22 }
 0x379   : > { %v1100_v58 = vmul.f32 %v2880_v48, %v1092_v59  ;;  %v1101_v55 = vmul.f32 %v2880_v48, %v1093_v32  ;;  %vm2890_vm2 = vmmov %vm2889_vm7  ;;  %v1159_v22 = vmul.f32 %v2883_v0, %v1151_v56 }
 0x37a   : > { %v1132_v8 = vpop.permute.xlu1 %1131  ;;  %v1102_v38 = vadd.f32 %v1098_v27, %v1040_v44 }
 0x37b   : > { %v1141_v57 = vsel %vm2870_vm0, %v1132_v8, %v2436_v60  ;;  %v1140_v60 = vsel %vm2875_vm13, %v2874_v54, %v1132_v8  ;;  %v1104_v7 = vadd.f32 %v1100_v58, %v1042_v52  ;;  %v1105_v42 = vadd.f32 %v1101_v55, %v1043_v47 }
 0x37c   : > { %v1149_v19 = vsel %vm2498_vm9, %v1141_v57, 0.0  ;;  %v1148_v11 = vsel %vm2521_vm6, %v1140_v60, 0.0  ;;  %v1223_v60 = vld [vmem:[%s494_s24] sm:$0xff]  ;;  %vm1284_vm9 = vcmask 1043456   ;;  %vm1280_vm6 = vcmask 64512  }
 0x37d   : > { %v1157_v2 = vmul.f32 %v2883_v0, %v1149_v19  ;;  %v1156_v15 = vmul.f32 %v2883_v0, %v1148_v11  ;;  %v1162_v31 = vadd.f32 %v1158_v3, %v1104_v7  ;;  %v1163_v21 = vadd.f32 %v1159_v22, %v1105_v42  ;;  %v1222_v11 = vld [vmem:[%s490_s27] sm:$0xff] }
 0x37e   : > { %v1188_v37 = vpop.permute.xlu1 %1187  ;;  %v1275_v3 = vld [vmem:[%s1850_s30] sm:$0x3] }
 0x37f   : > { %v1198_v1 = vsel %vm2881_vm11, %v1188_v37, %v1190_v10  ;;  %v1161_v23 = vadd.f32 %v1157_v2, %v1103_v50  ;;  %v1160_v18 = vadd.f32 %v1156_v15, %v1102_v38 }
 0x380   : > { %v1206_v20 = vsel %vm2885_vm14, %v1198_v1, 0.0 }
 0x381   : > { %v1214_v6 = vmul.f32 %v2888_v51, %v1206_v20 }
 0x382   : > { %v1192_v49 = vpop.permute.xlu1 %1191 }
 0x383   : > { %v1199_v34 = vsel %vm2886_vm12, %v1190_v10, %v1192_v49  ;;  %v1218_v35 = vadd.f32 %v1214_v6, %v1160_v18  ;;  %v1273_v18 = vld [vmem:[#allocation3] sm:$0xff] }
 0x384   : > { %v1207_v16 = vsel %vm2887_vm15, %v1199_v34, 0.0 }
 0x385   : > { %v1215_v29 = vmul.f32 %v2888_v51, %v1207_v16 }
 0x386   : > { %v1194_v8 = vpop.permute.xlu1 %1193 }
 0x387   : > { %v1219_v4 = vadd.f32 %v1215_v29, %v1161_v23  ;;  %v1200_v43 = vsel %vm2889_vm7, %v1192_v49, %v1194_v8  ;;  %v1201_v9 = vsel %vm2890_vm2, %v1194_v8, %v1196_v13 }
 0x388   : > { %v1208_v33 = vsel %vm2599_vm4, %v1200_v43, 0.0  ;;  %v1209_v57 = vsel %vm2603_vm1, %v1201_v9, 0.0  ;;  %v1274_v43 = vld [vmem:[#allocation3 + $0x8] sm:$0xff] }
 0x389   : > { %v1216_v53 = vmul.f32 %v2888_v51, %v1208_v33  ;;  %v1217_v36 = vmul.f32 %v2888_v51, %v1209_v57  ;;  %v1224_v39 = vadd.f32 %v1219_v4, %v1218_v35 }
 0x38b   : > { %v1220_v28 = vadd.f32 %v1216_v53, %v1162_v31  ;;  %v1221_v40 = vadd.f32 %v1217_v36, %v1163_v21 }
 0x38d   : > { %v1225_v63 = vadd.f32 %v1224_v39, %v1220_v28 }
 0x38f   : > { %v1226_v54 = vadd.f32 %v1225_v63, %v1221_v40 }
 0x391   : > { %1227 = vadd.xlane.f32.xlu1 %v1226_v54 }
 0x3a2   : > { %1258 = vperm.xlu1 %1670, %v1223_v60  }
 0x41e   : > { %v1228_v25 = vpop.xlane.xlu1 %1227 }
 0x41f   : > { %v1229_v45 = vmul.f32 0.001953125, %v1228_v25 }
 0x421   : > { %v1230_v10 = vsub.f32 %v1218_v35, %v1229_v45  ;;  %v1231_v46 = vsub.f32 %v1219_v4, %v1229_v45  ;;  %v1232_v61 = vsub.f32 %v1220_v28, %v1229_v45  ;;  %v1233_v59 = vsub.f32 %v1221_v40, %v1229_v45 }
 0x422   : > { %v1259_v17 = vpop.permute.xlu1 %1258 }
 0x423   : > { %v1234_v19 = vmul.f32 %v1230_v10, %v1230_v10  ;;  %v1235_v37 = vmul.f32 %v1231_v46, %v1231_v46  ;;  %v1236_v24 = vmul.f32 %v1232_v61, %v1232_v61  ;;  %v1237_v26 = vmul.f32 %v1233_v59, %v1233_v59 }
 0x425   : > { %v1238_v48 = vadd.f32 %v1235_v37, %v1234_v19 }
 0x427   : > { %v1239_v32 = vadd.f32 %v1238_v48, %v1236_v24  ;;  %v2891_v24 = vld [vmem:[#allocation14_spill] sm:$0xff] (!%p1619_p5) }
 0x429   : > { %v1240_v1 = vadd.f32 %v1239_v32, %v1237_v26 }
 0x42b   : > { %1241 = vadd.xlane.f32.xlu0 %v1240_v1 }
 0x4b8   : > { %v1242_v12 = vpop.xlane.xlu0 %1241 }
 0x4b9   : > { %v1243_v14 = vmul.f32 0.001953125, %v1242_v12 }
 0x4bb   : > { %v1244_v27 = vadd.f32 1e-05, %v1243_v14 }
 0x4bd   : > { %1675 = vrsqrt.f32 %v1244_v27 }
 0x4c7   : > { %v1676_v62 = vpop.eup %1675 }
 0x4c8   : > { %v1246_v5 = vmul.f32 %v1676_v62, %v1222_v11 }
 0x4ca   : > { %1249 = vperm.xlu0 %1669, %v1246_v5  }
 0x549   : > { %v1250_v41 = vpop.permute.xlu0 %1249 }
 0x54a   : > { %v1252_v58 = vmul.f32 %v1250_v41, %v1230_v10  ;;  %v1253_v0 = vmul.f32 %v1250_v41, %v1231_v46  ;;  %v1254_v2 = vmul.f32 %v1250_v41, %v1232_v61  ;;  %v1255_v44 = vmul.f32 %v1250_v41, %v1233_v59 }
 0x54b   : > { %v1740_v59 = vmov (!%p1619_p5), 839922192  }
 0x54c   : > { %v1261_v30 = vadd.f32 %v1259_v17, %v1252_v58  ;;  %v1262_v55 = vadd.f32 %v1259_v17, %v1253_v0  ;;  %v1263_v20 = vadd.f32 %v1259_v17, %v1254_v2  ;;  %v1264_v49 = vadd.f32 %v1259_v17, %v1255_v44 }
 0x54d   : > { %v1417_v19 = vunpack.c.l.s4 (!%p1619_p5), %v1740_v59 }
 0x54e   : > { %v1265_v52 = vmax.f32 %v1261_v30, 0.0  ;;  %v1266_v50 = vmax.f32 %v1262_v55, 0.0  ;;  %v1267_v15 = vmax.f32 %v1263_v20, 0.0  ;;  %v1268_v34 = vmax.f32 %v1264_v49, 0.0 }
 0x54f   : > { %v1418_v37 = vunpack.c.0.s8 (!%p1619_p5), %v1417_v19  ;;  %v1741_v55 = vmov (!%p1619_p5), 0  }
 0x550   : > { %v1270_v56 = vmin.f32 %v1266_v50, 6.0  ;;  %v1272_v47 = vmin.f32 %v1268_v34, 6.0  ;;  %v1269_v38 = vmin.f32 %v1265_v52, 6.0  ;;  %v1271_v16 = vmin.f32 %v1267_v15, 6.0  ;;  %1677 = vset.pattern.permute.xlu1 (!%p1619_p5), %v1741_v55  ;;  %1678 = vset.pattern.permute.xlu0 (!%p1619_p5), %v1741_v55  ;;  %v1397_v50 = vld [vmem:[%s2723_s10] sm:$0xf] (!%p1619_p5) }
 0x551   : > { %v1421_v48 = vsub.s32 (!%p1619_p5), %v1418_v37, %v2891_v24 }
 0x552   : > { %v1277_v13 = vpack.c.bf16 %v1270_v56, %v1270_v56  ;;  %v1279_v7 = vpack.c.bf16 %v1272_v47, %v1272_v47  ;;  %v1276_v23 = vpack.c.bf16 %v1269_v38, %v1269_v38  ;;  %v1278_v51 = vpack.c.bf16 %v1271_v16, %v1271_v16  ;;  %v1398_v56 = vld [vmem:[%s2892_s18] sm:$0xf] (!%p1619_p5) }
 0x554   : > { %1615 = vmatprep.subr.msk.bf16.mxu0 %vm1284_vm9, %v1277_v13  ;;  %1617 = vmatprep.subr.msk.bf16.mxu1 %vm1284_vm9, %v1279_v7  ;;  %v1286_v6 = vsel %vm1284_vm9, %v1276_v23, 0  ;;  %v1292_v29 = vsel %vm1284_vm9, %v1278_v51, 0  ;;  %v1475_v51 = vld [vmem:[%s2713_s0] sm:$0xff] (!%p1619_p5) }
 0x555   : > { %1298 = vmatpush1.bf16.msra.mxu0 %v1286_v6  ;;  %1339 = vmatpush1.bf16.msra.mxu1 %v1292_v29  ;;  %v1476_v6 = vld [vmem:[%s2713_s0 + $0x8] sm:$0xff] (!%p1619_p5) }
 0x558   : > { %1616 = vmatmul.mubr.msk.bf16.vlgmr.msra.gmra.mrb[4].mxu0 %vm1280_vm6, %v1275_v3  ;;  %1618 = vmatmul.mubr.msk.bf16.vlgmr.msra.gmra.mrb[4].mxu1 %vm1280_vm6, %v1275_v3 }
 0x62b   : > { %v1331_v42 = vpop.f32.mrb[4].mxu0  ;;  %v1372_v8 = vpop.f32.mrb[4].mxu1  ;;  %1394 = sbr.rel (%p1619_p5) target bundleno = 2059 (0x80b), region = 76 }
 0x62c   : > { %v1333_v4 = vpop.f32.mrb[5].mxu0  ;;  %v1374_v9 = vpop.f32.mrb[5].mxu1 }
 0x62d   : > { %v1383_v22 = vcombine.low %v1331_v42, %v1333_v4  ;;  %v1384_v33 = vcombine.low %v1372_v8, %v1374_v9  ;;  %v1335_v57 = vpop.f32.mrb[6].mxu0  ;;  %v1376_v35 = vpop.f32.mrb[6].mxu1 }
 0x62e   : > { %v1336_v53 = vpop.f32.mrb[7].mxu0  ;;  %v1377_v36 = vpop.f32.mrb[7].mxu1 }
 0x62f   : > { %v1387_v31 = vadd.f32 %v1383_v22, %v1273_v18  ;;  %v1388_v21 = vadd.f32 %v1384_v33, %v1274_v43 }
 0x631   : > { %1389 = vst [vmem:[#allocation3] sm:$0xff] %v1387_v31  ;;  %1390 = vst [vmem:[#allocation3 + $0x8] sm:$0xff] %v1388_v21 }
 0x638   : > { %v1395_v28 = vld [vmem:[#allocation3] sm:$0xff]  ;;  %v1396_v39 = vld [vmem:[#allocation3 + $0x8] sm:$0xff] }
 0x639   : > { %v1401_v40 = vcombine.high %v1395_v28, %v1395_v28  ;;  %v1402_v63 = vcombine.high %v1396_v39, %v1396_v39  ;;  %v1405_v54 = vsel %vm1284_vm9, %v1395_v28, 0.0  ;;  %v1408_v25 = vsel %vm1284_vm9, %v1396_v39, 0.0 }
 0x63b   : > { %v1406_v60 = vsel %vm1284_vm9, %v1401_v40, 0.0  ;;  %v1410_v10 = vsel %vm1284_vm9, %v1402_v63, 0.0 }
 0x63c   : > { %v1407_v45 = vadd.f32 %v1406_v60, %v1405_v54 }
 0x63e   : > { %v1409_v46 = vadd.f32 %v1408_v25, %v1407_v45 }
 0x640   : > { %v1411_v61 = vadd.f32 %v1410_v10, %v1409_v46 }
 0x642   : > { %1412 = vadd.xlane.f32.xlu0 %v1411_v61 }
 0x6cf   : > { %v1413_v26 = vpop.xlane.xlu0 %1412 }
 0x6d0   : > { %v1414_v32 = vmul.f32 0.001953125, %v1413_v26 }
 0x6d2   : > { %v1422_v1 = vrot.slane %v1414_v32, %v1421_v48 }
 0x6d4   : > { %v1424_v12 = vsub.f32 %v1395_v28, %v1422_v1  ;;  %v1425_v14 = vsub.f32 %v1396_v39, %v1422_v1 }
 0x6d6   : > { %v1426_v27 = vmul.f32 %v1424_v12, %v1424_v12  ;;  %v1427_v11 = vmul.f32 %v1425_v14, %v1425_v14 }
 0x6d8   : > { %v1430_v62 = vcombine.high %v1426_v27, %v1426_v27  ;;  %v1431_v5 = vcombine.high %v1427_v11, %v1427_v11  ;;  %v1434_v41 = vsel %vm1284_vm9, %v1426_v27, 0.0  ;;  %v1437_v2 = vsel %vm1284_vm9, %v1427_v11, 0.0 }
 0x6da   : > { %v1435_v58 = vsel %vm1284_vm9, %v1430_v62, 0.0  ;;  %v1439_v17 = vsel %vm1284_vm9, %v1431_v5, 0.0 }
 0x6db   : > { %v1436_v0 = vadd.f32 %v1435_v58, %v1434_v41 }
 0x6dd   : > { %v1438_v44 = vadd.f32 %v1437_v2, %v1436_v0 }
 0x6df   : > { %v1440_v30 = vadd.f32 %v1439_v17, %v1438_v44 }
 0x6e1   : > { %1441 = vadd.xlane.f32.xlu0 %v1440_v30 }
 0x76e   : > { %v1442_v20 = vpop.xlane.xlu0 %1441 }
 0x76f   : > { %v1443_v49 = vmul.f32 0.001953125, %v1442_v20 }
 0x771   : > { %v1444_v52 = vadd.f32 1e-05, %v1443_v49 }
 0x773   : > { %1681 = vrsqrt.f32 %v1444_v52 }
 0x77d   : > { %v1682_v15 = vpop.eup %1681 }
 0x77e   : > { %v1446_v34 = vmul.f32 %v1682_v15, %v1397_v50 }
 0x780   : > { %1449 = vperm.xlu1 %1677, %v1446_v34  }
 0x784   : > { %1463 = vperm.xlu1 %1677, %v1398_v56  }
 0x7ff   : > { %v1450_v47 = vpop.permute.xlu1 %1449 }
 0x800   : > { %v1457_v38 = vrot.slane %v1450_v47, %v1421_v48 }
 0x802   : > { %v1459_v13 = vmul.f32 %v1457_v38, %v1424_v12  ;;  %v1460_v7 = vmul.f32 %v1457_v38, %v1425_v14 }
 0x803   : > { %v1464_v16 = vpop.permute.xlu1 %1463 }
 0x804   : > { %v1471_v23 = vrot.slane %v1464_v16, %v1421_v48 }
 0x806   : > { %v1473_v29 = vadd.f32 %v1471_v23, %v1459_v13  ;;  %v1474_v3 = vadd.f32 %v1471_v23, %v1460_v7 }
 0x808   : > { %v1477_v42 = vadd.f32 %v1475_v51, %v1473_v29  ;;  %v1478_v8 = vadd.f32 %v1476_v6, %v1474_v3 }
 0x80a   : > { %1479 = vst [vmem:[#allocation4] sm:$0xff] %v1477_v42  ;;  %1480 = vst [vmem:[#allocation4 + $0x8] sm:$0xff] %v1478_v8 }
 0x80b PF: > { %p1628_p6 = scmp.eq.s32.totalorder %s1814_s22, 2  ;;  %s1742_s14 = smov [#allocation4]  }
 0x80c   : > { %s1488_s15 = sshll.u32 %s1742_s14, 4  ;;  %s1489_s15 = int_to_ptr.vmem [resolvable:$true] %s1488_s15 }
 0x80d   : > { %s1683_s13 = scalar_lea.vmem %s1489_s15, 256  ;;  %p1690_p10 = scmp.lt.s32.totalorder %s1489_s15, %s1489_s15 }
 0x80e   : > { %p1684_p7 = scmp.ne.s32.totalorder %s1489_s15, %s1683_s13  ;;  %p1691_p11 = scmp.lt.s32.totalorder %s1683_s13, %s1683_s13 }
 0x810   : > { %p1685_p8 = pnand %p1684_p7, %p1628_p6  ;;  %p1692_p12 = por %p1691_p11, %p1690_p10 }
 0x812   : > { %p1686_p9 = pneg %p1685_p8 }
 0x814   : > { %p1693_p13 = pnand %p1692_p12, %p1686_p9 }
 0x816   : > { %1696 = shalt.err (!%p1693_p13)
}
 0x817   : > { %s2893_s3 = sld [smem:[#allocation20_spill]] }
 0x81d   : > { %s1697_s11 = scalar_lea.hbm %s2893_s3, 256 }
 0x81e   : > { %p1698_p0 = scmp.ne.s32.totalorder %s2893_s3, %s1697_s11  ;;  %p1703_p3 = scmp.lt.u32.totalorder %s1697_s11, %s2893_s3 }
 0x820   : > { %p1699_p1 = pnand %p1698_p0, %p1628_p6 }
 0x822   : > { %p1700_p2 = pneg %p1699_p1 }
 0x824   : > { %p1705_p4 = pnand %p1703_p3, %p1700_p2 }
 0x826   : > { %1708 = shalt.err (!%p1705_p4)
}
 0x827   : > { %1625 = dma.vmem_to_hbm [thread:$0]  (%p1628_p6), %s1489_s15, 256, %s2893_s3, [#allocation5]  }
 0x828   : > { %1714 = dma.done.wait (%p1628_p6), [#allocation5], 256  }
 0x829   : > { %1716 = vsyncadd (%p1628_p6), [#allocation5], 4294967040 }
 0x82a PF: > { %s2894_s30 = sld [smem:[#allocation7_spill]] }
 0x830   : > { %s23_s21 = sadd.s32 1, %s2894_s30  }
 0x831   : > { %p20_p5 = scmp.ge.s32.totalorder %s23_s21, 5  }
 0x833   :  { %22 = sbr.rel (!%p20_p5) target bundleno = 5 (0x5), region = 121 }
 0x83a   :  { %1501 = vsyncpa [#allocation5], 1 }
 0x83b   :  { %1503 = vsyncpa [#allocation5 + $0x1], 1 }

</bundles_post_ra>
